<compile_context>
chip_gen: v5e
topology: v5e:2x2
jax: 0.10.0
libtpu: 0.0.40
codegen_flags: <defaults>
</compile_context>

<pallas_src>
import functools

import jax
import jax.numpy as jnp
from jax.experimental import pallas as pl
from jax.experimental.pallas import tpu as pltpu

PAD_IDX = 0  # stand-in for hp.pad_idx


# ----------------------------------------------------------------------------
# Pallas kernel: fused fwd+bwd recurrence of one bidirectional GRU layer
# ----------------------------------------------------------------------------
def _bigru_fused_kernel(gi_f_ref, gi_b_ref, whh_ref, bhn_ref, h0_ref,
                        out_f_ref, out_b_ref, hlast_ref,
                        hf_scr, hb_scr, *, hidden_dim, chunk):
    """Grid = (T_pad // chunk,)  [single sequential recurrence axis].

    gi_f_ref : (Tc, B, 3H) bf16   x @ W_ih^T + b_ih (+ folded b_hr/b_hz), fwd chunk c
    gi_b_ref : (Tc, B, 3H) bf16   same, bwd chunk NC-1-c
    whh_ref  : (2, H, 3H)  bf16   W_hh^T, [fwd, bwd]
    bhn_ref  : (2, 1, H)   f32    hidden bias of the n gate only
    h0_ref   : (2, B, H)   f32
    out_f_ref: (Tc, B, H)  bf16   written at time-chunk c
    out_b_ref: (Tc, B, H)  bf16   written at time-chunk NC-1-c
    hlast_ref: (2, B, H)   f32
    hf_scr, hb_scr : (B, H) f32   carried hidden states (fwd / bwd)
    """
    H = hidden_dim
    Tc = chunk
    B = h0_ref.shape[1]
    c = pl.program_id(0)

    @pl.when(c == 0)
    def _():
        hf_scr[...] = h0_ref[0].astype(jnp.float32)
        hb_scr[...] = h0_ref[1].astype(jnp.float32)

    # Hoisted once per chunk (JAX does not CSE broadcasts inside the unrolled loop).
    whh_f = whh_ref[0]
    whh_b = whh_ref[1]
    bhn_f = jnp.broadcast_to(bhn_ref[0], (B, H))
    bhn_b = jnp.broadcast_to(bhn_ref[1], (B, H))

    h_f = hf_scr[...]
    h_b = hb_scr[...]

    def gru_step(h, gi_bf16, whh, bhn):
        # Only the true recurrence runs here: bf16 MXU operands, f32 accumulate.
        gh = jnp.dot(h.astype(jnp.bfloat16), whh,
                     preferred_element_type=jnp.float32)            # (B, 3H)
        gi = gi_bf16.astype(jnp.float32)
        r = jax.nn.sigmoid(gi[:, 0 * H:1 * H] + gh[:, 0 * H:1 * H])
        z = jax.nn.sigmoid(gi[:, 1 * H:2 * H] + gh[:, 1 * H:2 * H])
        n = jnp.tanh(gi[:, 2 * H:3 * H] + r * (gh[:, 2 * H:3 * H] + bhn))
        return n + z * (h - n)            # == (1 - z) * n + z * h

    # Statically unrolled chunk: fwd walks it forward, bwd walks it backward,
    # both with purely static addresses.
    for i in range(Tc):
        j = Tc - 1 - i
        h_f = gru_step(h_f, gi_f_ref[i], whh_f, bhn_f)
        out_f_ref[i] = h_f.astype(out_f_ref.dtype)
        h_b = gru_step(h_b, gi_b_ref[j], whh_b, bhn_b)
        out_b_ref[j] = h_b.astype(out_b_ref.dtype)

    hf_scr[...] = h_f
    hb_scr[...] = h_b

    @pl.when(c == pl.num_programs(0) - 1)
    def _():
        hlast_ref[0] = hf_scr[...].astype(hlast_ref.dtype)
        hlast_ref[1] = hb_scr[...].astype(hlast_ref.dtype)


# ----------------------------------------------------------------------------
# Planning helpers (per-generation chunk size / VMEM limit)
# ----------------------------------------------------------------------------
def _vmem_capacity_bytes():
    try:
        info = pltpu.get_tpu_info()
        cap = getattr(info, "vmem_capacity_bytes", None)
        if cap:
            return int(cap)
    except Exception:
        pass
    return 64 * 1024 * 1024  # conservative fallback (v7x per-core VMEM)


def _plan(T, B, H, chunk_cap=32):
    """Pick time-chunk Tc, number of chunks NC and the scoped VMEM limit."""
    cap = _vmem_capacity_bytes()
    budget = int(0.6 * cap)                       # room for temporaries / spills
    fixed = 24 * H * H + (2 << 20)                # double-buffered bf16 W_hh + margin
    per_t = 32 * B * H                            # bf16 gi+out, 2 dirs, double-buffered
    tc_fit = (budget - fixed) // per_t if budget > fixed else 1
    tc = max(1, min(chunk_cap, T, tc_fit))
    nc = -(-T // tc)                              # ceil div; awkward T handled by padding
    vmem_limit = int(0.85 * cap)
    return tc, nc, vmem_limit


# ----------------------------------------------------------------------------
# Wrappers
# ----------------------------------------------------------------------------
def _input_proj(x_parts, w_ih, b_ih, b_hh, H):
    """gi = [x_f ; x_b] @ W_ih^T + b_ih + [b_hr, b_hz, 0], all T steps, one direction.

    Split-einsum over x_parts avoids materializing the (T, B, 2H) concat in HBM.
    """
    gi = None
    col = 0
    for xp in x_parts:
        di = xp.shape[-1]
        w = w_ih[:, col:col + di].astype(jnp.bfloat16)
        term = jnp.einsum("tbd,gd->tbg", xp.astype(jnp.bfloat16), w,
                          preferred_element_type=jnp.float32)
        gi = term if gi is None else gi + term
        col += di
    bias = b_ih.astype(jnp.float32)
    bias = bias.at[:2 * H].add(b_hh[:2 * H].astype(jnp.float32))  # fold r/z hidden biases
    return gi + bias                                              # (T, B, 3H) f32


def bigru_layer(gi_f, gi_b, w_hh, b_hh, h0):
    """One bidirectional GRU layer; both directions fused in a single pallas_call.

    gi_f, gi_b : (T, B, 3H) f32   precomputed input projections (fwd / bwd weights)
    w_hh       : (2, 3H, H)       PyTorch gate order (r, z, n)
    b_hh       : (2, 3H)
    h0         : (2, B, H)
    Returns: out_f (T,B,H) bf16, out_b (T,B,H) bf16, h_last (2,B,H) f32
    """
    T, B, G = gi_f.shape
    H = G // 3
    Tc, NC, vmem_limit = _plan(T, B, H)
    T_pad = Tc * NC

    if T_pad > T:
        # Identity GRU step on padded tail: z-gate pre-activation -> +inf => h' = h.
        pad = jnp.zeros((T_pad - T, B, 3 * H), jnp.float32)
        pad = pad.at[:, :, H:2 * H].set(1e4)
        gi_f = jnp.concatenate([gi_f, pad], axis=0)
        gi_b = jnp.concatenate([gi_b, pad], axis=0)

    gi_f = gi_f.astype(jnp.bfloat16)
    gi_b = gi_b.astype(jnp.bfloat16)
    whh_t = jnp.transpose(w_hh, (0, 2, 1)).astype(jnp.bfloat16)     # (2, H, 3H)
    bhn = b_hh[:, 2 * H:3 * H].reshape(2, 1, H).astype(jnp.float32)
    h0 = h0.astype(jnp.float32)

    kernel = functools.partial(_bigru_fused_kernel, hidden_dim=H, chunk=Tc)
    grid_spec = pltpu.PrefetchScalarGridSpec(
        num_scalar_prefetch=0,
        grid=(NC,),
        in_specs=[
            pl.BlockSpec((Tc, B, 3 * H), lambda c: (c, 0, 0)),            # gi fwd chunk
            pl.BlockSpec((Tc, B, 3 * H), lambda c: (NC - 1 - c, 0, 0)),   # gi bwd chunk
            pl.BlockSpec((2, H, 3 * H), lambda c: (0, 0, 0)),             # W_hh^T (grid-invariant)
            pl.BlockSpec((2, 1, H), lambda c: (0, 0, 0)),                 # b_hn
            pl.BlockSpec((2, B, H), lambda c: (0, 0, 0)),                 # h0
        ],
        out_specs=[
            pl.BlockSpec((Tc, B, H), lambda c: (c, 0, 0)),                # out fwd
            pl.BlockSpec((Tc, B, H), lambda c: (NC - 1 - c, 0, 0)),       # out bwd
            pl.BlockSpec((2, B, H), lambda c: (0, 0, 0)),                 # last hidden
        ],
        scratch_shapes=[pltpu.VMEM((B, H), jnp.float32),
                        pltpu.VMEM((B, H), jnp.float32)],
    )

    out_f, out_b, h_last = pl.pallas_call(
        kernel,
        out_shape=(
            jax.ShapeDtypeStruct((T_pad, B, H), jnp.bfloat16),
            jax.ShapeDtypeStruct((T_pad, B, H), jnp.bfloat16),
            jax.ShapeDtypeStruct((2, B, H), jnp.float32),
        ),
        grid_spec=grid_spec,
        compiler_params=pltpu.CompilerParams(
            dimension_semantics=("arbitrary",),       # single sequential recurrence axis
            vmem_limit_bytes=vmem_limit),
    )(gi_f, gi_b, whh_t, bhn, h0)
    return out_f[:T], out_b[:T], h_last


def encoder_forward(source, params, hidden=None):
    """Forward pass of the Encoder.

    source: (T, B) int32
    returns (encoder_out (T, B, H), encoder_hidden (n_layers*2, B, H))
    """
    embed_w = params["embed"]              # (V, E)
    layers = params["gru"]                 # list of per-layer dicts
    n_layers = len(layers)
    H = layers[0]["w_hh"].shape[-1]
    T, B = source.shape

    embedded = jnp.take(embed_w, source, axis=0)         # (T, B, E) f32

    if hidden is None:
        hidden = jnp.zeros((n_layers * 2, B, H), jnp.float32)
    hidden = hidden.reshape(n_layers, 2, B, H)            # [layer][fwd, bwd]

    x_parts = (embedded,)
    h_finals = []
    out_f = out_b = None
    for li in range(n_layers):
        lyr = layers[li]
        # Hoisted non-recurrent projection: one big parallel bf16 matmul per direction.
        gi_f = _input_proj(x_parts, lyr["w_ih"][0], lyr["b_ih"][0], lyr["b_hh"][0], H)
        gi_b = _input_proj(x_parts, lyr["w_ih"][1], lyr["b_ih"][1], lyr["b_hh"][1], H)
        out_f, out_b, h_last = bigru_layer(gi_f, gi_b, lyr["w_hh"], lyr["b_hh"],
                                           hidden[li])
        h_finals.append(h_last)                           # (2, B, H)
        # Next layer consumes [out_f ; out_b] via the split projection (no HBM concat).
        x_parts = (out_f, out_b)

    encoder_hidden = jnp.concatenate(h_finals, axis=0)    # (n_layers*2, B, H)
    # encoder_out[:, :, :H] + encoder_out[:, :, H:] == out_fwd + out_bwd
    encoder_out = out_f.astype(jnp.float32) + out_b.astype(jnp.float32)
    return encoder_out, encoder_hidden


# ----------------------------------------------------------------------------
# Pure-JAX reference (f32, lax.scan) for correctness checking
# ----------------------------------------------------------------------------
def _gru_dir_ref(x, w_ih, w_hh, b_ih, b_hh, h0, reverse):
    H = w_hh.shape[-1]

    def step(h, xt):
        gi = xt @ w_ih.T + b_ih
        gh = h @ w_hh.T + b_hh
        r = jax.nn.sigmoid(gi[:, :H] + gh[:, :H])
        z = jax.nn.sigmoid(gi[:, H:2 * H] + gh[:, H:2 * H])
        n = jnp.tanh(gi[:, 2 * H:] + r * gh[:, 2 * H:])
        h = (1.0 - z) * n + z * h
        return h, h

    h_last, ys = jax.lax.scan(step, h0, x, reverse=reverse)
    return ys, h_last


def encoder_forward_ref(source, params, hidden=None):
    embed_w = params["embed"]
    layers = params["gru"]
    n_layers = len(layers)
    H = layers[0]["w_hh"].shape[-1]
    T, B = source.shape
    x = jnp.take(embed_w, source, axis=0)
    if hidden is None:
        hidden = jnp.zeros((n_layers * 2, B, H), jnp.float32)
    hidden = hidden.reshape(n_layers, 2, B, H)
    h_finals = []
    for li, lyr in enumerate(layers):
        yf, hf = _gru_dir_ref(x, lyr["w_ih"][0], lyr["w_hh"][0], lyr["b_ih"][0],
                              lyr["b_hh"][0], hidden[li, 0], reverse=False)
        yb, hb = _gru_dir_ref(x, lyr["w_ih"][1], lyr["w_hh"][1], lyr["b_ih"][1],
                              lyr["b_hh"][1], hidden[li, 1], reverse=True)
        h_finals.append(jnp.stack([hf, hb], axis=0))
        x = jnp.concatenate([yf, yb], axis=-1)
    enc_hidden = jnp.concatenate(h_finals, axis=0)
    enc_out = x[:, :, :H] + x[:, :, H:]
    return enc_out, enc_hidden


# ----------------------------------------------------------------------------
# Deterministic parameter construction (PyTorch-style shapes/init)
# ----------------------------------------------------------------------------
def init_params(key, vocab, embed_dim, hidden_dim, n_layers):
    keys = jax.random.split(key, 1 + n_layers * 4)
    ki = iter(keys)

    embed = jax.random.normal(next(ki), (vocab, embed_dim), jnp.float32)
    embed = embed.at[PAD_IDX].set(0.0)   # padding_idx row zeroed, as nn.Embedding

    bound = float(hidden_dim) ** -0.5
    layers = []
    for li in range(n_layers):
        din = embed_dim if li == 0 else 2 * hidden_dim
        layers.append({
            # leading dim 2 = [forward, backward] direction, gate order (r, z, n)
            "w_ih": jax.random.uniform(next(ki), (2, 3 * hidden_dim, din),
                                       jnp.float32, -bound, bound),
            "w_hh": jax.random.uniform(next(ki), (2, 3 * hidden_dim, hidden_dim),
                                       jnp.float32, -bound, bound),
            "b_ih": jax.random.uniform(next(ki), (2, 3 * hidden_dim),
                                       jnp.float32, -bound, bound),
            "b_hh": jax.random.uniform(next(ki), (2, 3 * hidden_dim),
                                       jnp.float32, -bound, bound),
        })
    return {"embed": embed, "gru": layers}


# ----------------------------------------------------------------------------
if __name__ == "__main__":
    # small, module-consistent shapes
    SEQ, BATCH = 8, 2
    VOCAB, EMBED, HIDDEN, N_LAYERS = 50, 32, 32, 2

    key = jax.random.PRNGKey(0)
    k_param, k_src = jax.random.split(key)
    params = init_params(k_param, VOCAB, EMBED, HIDDEN, N_LAYERS)
    source = jax.random.randint(k_src, (SEQ, BATCH), 0, VOCAB, dtype=jnp.int32)

    fwd = jax.jit(functools.partial(encoder_forward, params=params))
    encoder_out, encoder_hidden = fwd(source)
    jax.block_until_ready((encoder_out, encoder_hidden))

    assert encoder_out.shape == (SEQ, BATCH, HIDDEN)
    assert encoder_hidden.shape == (N_LAYERS * 2, BATCH, HIDDEN)
    assert bool(jnp.all(jnp.isfinite(encoder_out)))
    assert bool(jnp.all(jnp.isfinite(encoder_hidden)))

    # Correctness vs the pure-JAX f32 reference (bf16 MXU path => loose tolerance).
    ref_out, ref_hidden = encoder_forward_ref(source, params)
    err_out = float(jnp.max(jnp.abs(encoder_out - ref_out)))
    err_hid = float(jnp.max(jnp.abs(encoder_hidden - ref_hidden)))
    assert err_out < 0.1 and err_hid < 0.1

    print("KERNEL_OK")
</pallas_src>

<mosaic_0001>
module attributes {stable_mosaic.version = 11 : i64} {
  func.func @_bigru_fused_kernel(%arg0: i32, %arg1: memref<8x2x96xbf16, #tpu.memory_space<vmem>>, %arg2: memref<8x2x96xbf16, #tpu.memory_space<vmem>>, %arg3: memref<2x32x96xbf16, #tpu.memory_space<vmem>>, %arg4: memref<2x1x32xf32, #tpu.memory_space<vmem>>, %arg5: memref<2x2x32xf32, #tpu.memory_space<vmem>>, %arg6: memref<8x2x32xbf16, #tpu.memory_space<vmem>>, %arg7: memref<8x2x32xbf16, #tpu.memory_space<vmem>>, %arg8: memref<2x2x32xf32, #tpu.memory_space<vmem>>, %arg9: memref<2x32xf32, #tpu.memory_space<vmem>>, %arg10: memref<2x32xf32, #tpu.memory_space<vmem>>) attributes {dimension_semantics = [#tpu.dimension_semantics<arbitrary>], iteration_bounds = array<i64: 1>, scalar_prefetch = 0 : i64, scratch_operands = 2 : i64, tpu.core_type = #tpu.core_type<tc>, window_params = [{transform_indices = @transform_0, window_bounds = array<i64: 8, 2, 96>}, {transform_indices = @transform_1, window_bounds = array<i64: 8, 2, 96>}, {pipeline_mode = #tpu.pipeline_mode<synchronous>, transform_indices = @transform_2, window_bounds = array<i64: 2, 32, 96>}, {pipeline_mode = #tpu.pipeline_mode<synchronous>, transform_indices = @transform_3, window_bounds = array<i64: 2, 1, 32>}, {pipeline_mode = #tpu.pipeline_mode<synchronous>, transform_indices = @transform_4, window_bounds = array<i64: 2, 2, 32>}, {transform_indices = @transform_5, window_bounds = array<i64: 8, 2, 32>}, {transform_indices = @transform_6, window_bounds = array<i64: 8, 2, 32>}, {pipeline_mode = #tpu.pipeline_mode<synchronous>, transform_indices = @transform_7, window_bounds = array<i64: 2, 2, 32>}]} {
    %c0_i32 = arith.constant 0 : i32
    %0 = arith.cmpi eq, %arg0, %c0_i32 : i32
    %1 = arith.extui %0 : i1 to i32
    %c0_i32_0 = arith.constant 0 : i32
    %2 = arith.cmpi ne, %1, %c0_i32_0 : i32
    scf.if %2 {
      %c0_158 = arith.constant 0 : index
      %c0_159 = arith.constant 0 : index
      %c0_160 = arith.constant 0 : index
      %566 = vector.load %arg5[%c0_158, %c0_159, %c0_160] : memref<2x2x32xf32, #tpu.memory_space<vmem>>, vector<1x2x32xf32>
      %567 = vector.shape_cast %566 : vector<1x2x32xf32> to vector<2x32xf32>
      %c0_161 = arith.constant 0 : index
      %c0_162 = arith.constant 0 : index
      %568 = vector.load %arg9[%c0_161, %c0_162] : memref<2x32xf32, #tpu.memory_space<vmem>>, vector<2x32xf32>
      tpu.vector_store %arg9[%c0_161, %c0_162], %567 {strides = array<i32>} : memref<2x32xf32, #tpu.memory_space<vmem>>, vector<2x32xf32>,
      %c1_163 = arith.constant 1 : index
      %c0_164 = arith.constant 0 : index
      %c0_165 = arith.constant 0 : index
      %569 = vector.load %arg5[%c1_163, %c0_164, %c0_165] : memref<2x2x32xf32, #tpu.memory_space<vmem>>, vector<1x2x32xf32>
      %570 = vector.shape_cast %569 : vector<1x2x32xf32> to vector<2x32xf32>
      %c0_166 = arith.constant 0 : index
      %c0_167 = arith.constant 0 : index
      %571 = vector.load %arg10[%c0_166, %c0_167] : memref<2x32xf32, #tpu.memory_space<vmem>>, vector<2x32xf32>
      tpu.vector_store %arg10[%c0_166, %c0_167], %570 {strides = array<i32>} : memref<2x32xf32, #tpu.memory_space<vmem>>, vector<2x32xf32>,
    } else {
    }
    %c0 = arith.constant 0 : index
    %c0_1 = arith.constant 0 : index
    %c0_2 = arith.constant 0 : index
    %3 = vector.load %arg3[%c0, %c0_1, %c0_2] : memref<2x32x96xbf16, #tpu.memory_space<vmem>>, vector<1x32x96xbf16>
    %4 = vector.shape_cast %3 : vector<1x32x96xbf16> to vector<32x96xbf16>
    %c1 = arith.constant 1 : index
    %c0_3 = arith.constant 0 : index
    %c0_4 = arith.constant 0 : index
    %5 = vector.load %arg3[%c1, %c0_3, %c0_4] : memref<2x32x96xbf16, #tpu.memory_space<vmem>>, vector<1x32x96xbf16>
    %6 = vector.shape_cast %5 : vector<1x32x96xbf16> to vector<32x96xbf16>
    %c0_5 = arith.constant 0 : index
    %c0_6 = arith.constant 0 : index
    %c0_7 = arith.constant 0 : index
    %7 = vector.load %arg4[%c0_5, %c0_6, %c0_7] : memref<2x1x32xf32, #tpu.memory_space<vmem>>, vector<1x1x32xf32>
    %8 = vector.shape_cast %7 : vector<1x1x32xf32> to vector<1x32xf32>
    %9 = vector.shape_cast %8 : vector<1x32xf32> to vector<1x32xf32>
    %10 = vector.broadcast %9 : vector<1x32xf32> to vector<2x32xf32>
    %c1_8 = arith.constant 1 : index
    %c0_9 = arith.constant 0 : index
    %c0_10 = arith.constant 0 : index
    %11 = vector.load %arg4[%c1_8, %c0_9, %c0_10] : memref<2x1x32xf32, #tpu.memory_space<vmem>>, vector<1x1x32xf32>
    %12 = vector.shape_cast %11 : vector<1x1x32xf32> to vector<1x32xf32>
    %13 = vector.shape_cast %12 : vector<1x32xf32> to vector<1x32xf32>
    %14 = vector.broadcast %13 : vector<1x32xf32> to vector<2x32xf32>
    %c0_11 = arith.constant 0 : index
    %c0_12 = arith.constant 0 : index
    %15 = vector.load %arg9[%c0_11, %c0_12] : memref<2x32xf32, #tpu.memory_space<vmem>>, vector<2x32xf32>
    %c0_13 = arith.constant 0 : index
    %c0_14 = arith.constant 0 : index
    %16 = vector.load %arg10[%c0_13, %c0_14] : memref<2x32xf32, #tpu.memory_space<vmem>>, vector<2x32xf32>
    %c0_15 = arith.constant 0 : index
    %c0_16 = arith.constant 0 : index
    %c0_17 = arith.constant 0 : index
    %17 = vector.load %arg1[%c0_15, %c0_16, %c0_17] : memref<8x2x96xbf16, #tpu.memory_space<vmem>>, vector<1x2x96xbf16>
    %18 = vector.shape_cast %17 : vector<1x2x96xbf16> to vector<2x96xbf16>
    %19 = arith.truncf %15 : vector<2x32xf32> to vector<2x32xbf16>
    %cst = arith.constant dense<0.000000e+00> : vector<2x96xf32>
    %20 = tpu.matmul %19, %4, %cst {dimension_numbers = #tpu.dot_dimension_numbers<[1], [0], [0], [1], [0, 0, 1, 1], [], []>} : vector<2x32xbf16>, vector<32x96xbf16>, vector<2x96xf32> -> vector<2x96xf32>
    %21 = arith.extf %18 : vector<2x96xbf16> to vector<2x96xf32>
    %22 = vector.extract_strided_slice %21 {offsets = [0, 0], sizes = [2, 32], strides = [1, 1]} : vector<2x96xf32> to vector<2x32xf32>
    %23 = vector.extract_strided_slice %20 {offsets = [0, 0], sizes = [2, 32], strides = [1, 1]} : vector<2x96xf32> to vector<2x32xf32>
    %24 = arith.addf %22, %23 : vector<2x32xf32>
    %25 = arith.negf %24 : vector<2x32xf32>
    %26 = math.exp %25 : vector<2x32xf32>
    %cst_18 = arith.constant 1.000000e+00 : f32
    %27 = vector.broadcast %cst_18 : f32 to vector<2x32xf32>
    %28 = arith.addf %27, %26 : vector<2x32xf32>
    %29 = arith.divf %27, %28 : vector<2x32xf32>
    %30 = vector.extract_strided_slice %21 {offsets = [0, 32], sizes = [2, 32], strides = [1, 1]} : vector<2x96xf32> to vector<2x32xf32>
    %31 = vector.extract_strided_slice %20 {offsets = [0, 32], sizes = [2, 32], strides = [1, 1]} : vector<2x96xf32> to vector<2x32xf32>
    %32 = arith.addf %30, %31 : vector<2x32xf32>
    %33 = arith.negf %32 : vector<2x32xf32>
    %34 = math.exp %33 : vector<2x32xf32>
    %cst_19 = arith.constant 1.000000e+00 : f32
    %35 = vector.broadcast %cst_19 : f32 to vector<2x32xf32>
    %36 = arith.addf %35, %34 : vector<2x32xf32>
    %37 = arith.divf %35, %36 : vector<2x32xf32>
    %38 = vector.extract_strided_slice %21 {offsets = [0, 64], sizes = [2, 32], strides = [1, 1]} : vector<2x96xf32> to vector<2x32xf32>
    %39 = vector.extract_strided_slice %20 {offsets = [0, 64], sizes = [2, 32], strides = [1, 1]} : vector<2x96xf32> to vector<2x32xf32>
    %40 = arith.addf %39, %10 : vector<2x32xf32>
    %41 = arith.mulf %29, %40 : vector<2x32xf32>
    %42 = arith.addf %38, %41 : vector<2x32xf32>
    %43 = math.tanh %42 : vector<2x32xf32>
    %44 = arith.subf %15, %43 : vector<2x32xf32>
    %45 = arith.mulf %37, %44 : vector<2x32xf32>
    %46 = arith.addf %43, %45 : vector<2x32xf32>
    %47 = arith.truncf %46 : vector<2x32xf32> to vector<2x32xbf16>
    %c0_20 = arith.constant 0 : index
    %c0_21 = arith.constant 0 : index
    %c0_22 = arith.constant 0 : index
    %48 = vector.load %arg6[%c0_20, %c0_21, %c0_22] : memref<8x2x32xbf16, #tpu.memory_space<vmem>>, vector<1x2x32xbf16>
    %49 = vector.shape_cast %48 : vector<1x2x32xbf16> to vector<2x32xbf16>
    %50 = vector.shape_cast %47 : vector<2x32xbf16> to vector<1x2x32xbf16>
    tpu.vector_store %arg6[%c0_20, %c0_21, %c0_22], %50 {strides = array<i32>} : memref<8x2x32xbf16, #tpu.memory_space<vmem>>, vector<1x2x32xbf16>,
    %c7 = arith.constant 7 : index
    %c0_23 = arith.constant 0 : index
    %c0_24 = arith.constant 0 : index
    %51 = vector.load %arg2[%c7, %c0_23, %c0_24] : memref<8x2x96xbf16, #tpu.memory_space<vmem>>, vector<1x2x96xbf16>
    %52 = vector.shape_cast %51 : vector<1x2x96xbf16> to vector<2x96xbf16>
    %53 = arith.truncf %16 : vector<2x32xf32> to vector<2x32xbf16>
    %cst_25 = arith.constant dense<0.000000e+00> : vector<2x96xf32>
    %54 = tpu.matmul %53, %6, %cst_25 {dimension_numbers = #tpu.dot_dimension_numbers<[1], [0], [0], [1], [0, 0, 1, 1], [], []>} : vector<2x32xbf16>, vector<32x96xbf16>, vector<2x96xf32> -> vector<2x96xf32>
    %55 = arith.extf %52 : vector<2x96xbf16> to vector<2x96xf32>
    %56 = vector.extract_strided_slice %55 {offsets = [0, 0], sizes = [2, 32], strides = [1, 1]} : vector<2x96xf32> to vector<2x32xf32>
    %57 = vector.extract_strided_slice %54 {offsets = [0, 0], sizes = [2, 32], strides = [1, 1]} : vector<2x96xf32> to vector<2x32xf32>
    %58 = arith.addf %56, %57 : vector<2x32xf32>
    %59 = arith.negf %58 : vector<2x32xf32>
    %60 = math.exp %59 : vector<2x32xf32>
    %cst_26 = arith.constant 1.000000e+00 : f32
    %61 = vector.broadcast %cst_26 : f32 to vector<2x32xf32>
    %62 = arith.addf %61, %60 : vector<2x32xf32>
    %63 = arith.divf %61, %62 : vector<2x32xf32>
    %64 = vector.extract_strided_slice %55 {offsets = [0, 32], sizes = [2, 32], strides = [1, 1]} : vector<2x96xf32> to vector<2x32xf32>
    %65 = vector.extract_strided_slice %54 {offsets = [0, 32], sizes = [2, 32], strides = [1, 1]} : vector<2x96xf32> to vector<2x32xf32>
    %66 = arith.addf %64, %65 : vector<2x32xf32>
    %67 = arith.negf %66 : vector<2x32xf32>
    %68 = math.exp %67 : vector<2x32xf32>
    %cst_27 = arith.constant 1.000000e+00 : f32
    %69 = vector.broadcast %cst_27 : f32 to vector<2x32xf32>
    %70 = arith.addf %69, %68 : vector<2x32xf32>
    %71 = arith.divf %69, %70 : vector<2x32xf32>
    %72 = vector.extract_strided_slice %55 {offsets = [0, 64], sizes = [2, 32], strides = [1, 1]} : vector<2x96xf32> to vector<2x32xf32>
    %73 = vector.extract_strided_slice %54 {offsets = [0, 64], sizes = [2, 32], strides = [1, 1]} : vector<2x96xf32> to vector<2x32xf32>
    %74 = arith.addf %73, %14 : vector<2x32xf32>
    %75 = arith.mulf %63, %74 : vector<2x32xf32>
    %76 = arith.addf %72, %75 : vector<2x32xf32>
    %77 = math.tanh %76 : vector<2x32xf32>
    %78 = arith.subf %16, %77 : vector<2x32xf32>
    %79 = arith.mulf %71, %78 : vector<2x32xf32>
    %80 = arith.addf %77, %79 : vector<2x32xf32>
    %81 = arith.truncf %80 : vector<2x32xf32> to vector<2x32xbf16>
    %c7_28 = arith.constant 7 : index
    %c0_29 = arith.constant 0 : index
    %c0_30 = arith.constant 0 : index
    %82 = vector.load %arg7[%c7_28, %c0_29, %c0_30] : memref<8x2x32xbf16, #tpu.memory_space<vmem>>, vector<1x2x32xbf16>
    %83 = vector.shape_cast %82 : vector<1x2x32xbf16> to vector<2x32xbf16>
    %84 = vector.shape_cast %81 : vector<2x32xbf16> to vector<1x2x32xbf16>
    tpu.vector_store %arg7[%c7_28, %c0_29, %c0_30], %84 {strides = array<i32>} : memref<8x2x32xbf16, #tpu.memory_space<vmem>>, vector<1x2x32xbf16>,
    %c1_31 = arith.constant 1 : index
    %c0_32 = arith.constant 0 : index
    %c0_33 = arith.constant 0 : index
    %85 = vector.load %arg1[%c1_31, %c0_32, %c0_33] : memref<8x2x96xbf16, #tpu.memory_space<vmem>>, vector<1x2x96xbf16>
    %86 = vector.shape_cast %85 : vector<1x2x96xbf16> to vector<2x96xbf16>
    %87 = arith.truncf %46 : vector<2x32xf32> to vector<2x32xbf16>
    %cst_34 = arith.constant dense<0.000000e+00> : vector<2x96xf32>
    %88 = tpu.matmul %87, %4, %cst_34 {dimension_numbers = #tpu.dot_dimension_numbers<[1], [0], [0], [1], [0, 0, 1, 1], [], []>} : vector<2x32xbf16>, vector<32x96xbf16>, vector<2x96xf32> -> vector<2x96xf32>
    %89 = arith.extf %86 : vector<2x96xbf16> to vector<2x96xf32>
    %90 = vector.extract_strided_slice %89 {offsets = [0, 0], sizes = [2, 32], strides = [1, 1]} : vector<2x96xf32> to vector<2x32xf32>
    %91 = vector.extract_strided_slice %88 {offsets = [0, 0], sizes = [2, 32], strides = [1, 1]} : vector<2x96xf32> to vector<2x32xf32>
    %92 = arith.addf %90, %91 : vector<2x32xf32>
    %93 = arith.negf %92 : vector<2x32xf32>
    %94 = math.exp %93 : vector<2x32xf32>
    %cst_35 = arith.constant 1.000000e+00 : f32
    %95 = vector.broadcast %cst_35 : f32 to vector<2x32xf32>
    %96 = arith.addf %95, %94 : vector<2x32xf32>
    %97 = arith.divf %95, %96 : vector<2x32xf32>
    %98 = vector.extract_strided_slice %89 {offsets = [0, 32], sizes = [2, 32], strides = [1, 1]} : vector<2x96xf32> to vector<2x32xf32>
    %99 = vector.extract_strided_slice %88 {offsets = [0, 32], sizes = [2, 32], strides = [1, 1]} : vector<2x96xf32> to vector<2x32xf32>
    %100 = arith.addf %98, %99 : vector<2x32xf32>
    %101 = arith.negf %100 : vector<2x32xf32>
    %102 = math.exp %101 : vector<2x32xf32>
    %cst_36 = arith.constant 1.000000e+00 : f32
    %103 = vector.broadcast %cst_36 : f32 to vector<2x32xf32>
    %104 = arith.addf %103, %102 : vector<2x32xf32>
    %105 = arith.divf %103, %104 : vector<2x32xf32>
    %106 = vector.extract_strided_slice %89 {offsets = [0, 64], sizes = [2, 32], strides = [1, 1]} : vector<2x96xf32> to vector<2x32xf32>
    %107 = vector.extract_strided_slice %88 {offsets = [0, 64], sizes = [2, 32], strides = [1, 1]} : vector<2x96xf32> to vector<2x32xf32>
    %108 = arith.addf %107, %10 : vector<2x32xf32>
    %109 = arith.mulf %97, %108 : vector<2x32xf32>
    %110 = arith.addf %106, %109 : vector<2x32xf32>
    %111 = math.tanh %110 : vector<2x32xf32>
    %112 = arith.subf %46, %111 : vector<2x32xf32>
    %113 = arith.mulf %105, %112 : vector<2x32xf32>
    %114 = arith.addf %111, %113 : vector<2x32xf32>
    %115 = arith.truncf %114 : vector<2x32xf32> to vector<2x32xbf16>
    %c1_37 = arith.constant 1 : index
    %c0_38 = arith.constant 0 : index
    %c0_39 = arith.constant 0 : index
    %116 = vector.load %arg6[%c1_37, %c0_38, %c0_39] : memref<8x2x32xbf16, #tpu.memory_space<vmem>>, vector<1x2x32xbf16>
    %117 = vector.shape_cast %116 : vector<1x2x32xbf16> to vector<2x32xbf16>
    %118 = vector.shape_cast %115 : vector<2x32xbf16> to vector<1x2x32xbf16>
    tpu.vector_store %arg6[%c1_37, %c0_38, %c0_39], %118 {strides = array<i32>} : memref<8x2x32xbf16, #tpu.memory_space<vmem>>, vector<1x2x32xbf16>,
    %c6 = arith.constant 6 : index
    %c0_40 = arith.constant 0 : index
    %c0_41 = arith.constant 0 : index
    %119 = vector.load %arg2[%c6, %c0_40, %c0_41] : memref<8x2x96xbf16, #tpu.memory_space<vmem>>, vector<1x2x96xbf16>
    %120 = vector.shape_cast %119 : vector<1x2x96xbf16> to vector<2x96xbf16>
    %121 = arith.truncf %80 : vector<2x32xf32> to vector<2x32xbf16>
    %cst_42 = arith.constant dense<0.000000e+00> : vector<2x96xf32>
    %122 = tpu.matmul %121, %6, %cst_42 {dimension_numbers = #tpu.dot_dimension_numbers<[1], [0], [0], [1], [0, 0, 1, 1], [], []>} : vector<2x32xbf16>, vector<32x96xbf16>, vector<2x96xf32> -> vector<2x96xf32>
    %123 = arith.extf %120 : vector<2x96xbf16> to vector<2x96xf32>
    %124 = vector.extract_strided_slice %123 {offsets = [0, 0], sizes = [2, 32], strides = [1, 1]} : vector<2x96xf32> to vector<2x32xf32>
    %125 = vector.extract_strided_slice %122 {offsets = [0, 0], sizes = [2, 32], strides = [1, 1]} : vector<2x96xf32> to vector<2x32xf32>
    %126 = arith.addf %124, %125 : vector<2x32xf32>
    %127 = arith.negf %126 : vector<2x32xf32>
    %128 = math.exp %127 : vector<2x32xf32>
    %cst_43 = arith.constant 1.000000e+00 : f32
    %129 = vector.broadcast %cst_43 : f32 to vector<2x32xf32>
    %130 = arith.addf %129, %128 : vector<2x32xf32>
    %131 = arith.divf %129, %130 : vector<2x32xf32>
    %132 = vector.extract_strided_slice %123 {offsets = [0, 32], sizes = [2, 32], strides = [1, 1]} : vector<2x96xf32> to vector<2x32xf32>
    %133 = vector.extract_strided_slice %122 {offsets = [0, 32], sizes = [2, 32], strides = [1, 1]} : vector<2x96xf32> to vector<2x32xf32>
    %134 = arith.addf %132, %133 : vector<2x32xf32>
    %135 = arith.negf %134 : vector<2x32xf32>
    %136 = math.exp %135 : vector<2x32xf32>
    %cst_44 = arith.constant 1.000000e+00 : f32
    %137 = vector.broadcast %cst_44 : f32 to vector<2x32xf32>
    %138 = arith.addf %137, %136 : vector<2x32xf32>
    %139 = arith.divf %137, %138 : vector<2x32xf32>
    %140 = vector.extract_strided_slice %123 {offsets = [0, 64], sizes = [2, 32], strides = [1, 1]} : vector<2x96xf32> to vector<2x32xf32>
    %141 = vector.extract_strided_slice %122 {offsets = [0, 64], sizes = [2, 32], strides = [1, 1]} : vector<2x96xf32> to vector<2x32xf32>
    %142 = arith.addf %141, %14 : vector<2x32xf32>
    %143 = arith.mulf %131, %142 : vector<2x32xf32>
    %144 = arith.addf %140, %143 : vector<2x32xf32>
    %145 = math.tanh %144 : vector<2x32xf32>
    %146 = arith.subf %80, %145 : vector<2x32xf32>
    %147 = arith.mulf %139, %146 : vector<2x32xf32>
    %148 = arith.addf %145, %147 : vector<2x32xf32>
    %149 = arith.truncf %148 : vector<2x32xf32> to vector<2x32xbf16>
    %c6_45 = arith.constant 6 : index
    %c0_46 = arith.constant 0 : index
    %c0_47 = arith.constant 0 : index
    %150 = vector.load %arg7[%c6_45, %c0_46, %c0_47] : memref<8x2x32xbf16, #tpu.memory_space<vmem>>, vector<1x2x32xbf16>
    %151 = vector.shape_cast %150 : vector<1x2x32xbf16> to vector<2x32xbf16>
    %152 = vector.shape_cast %149 : vector<2x32xbf16> to vector<1x2x32xbf16>
    tpu.vector_store %arg7[%c6_45, %c0_46, %c0_47], %152 {strides = array<i32>} : memref<8x2x32xbf16, #tpu.memory_space<vmem>>, vector<1x2x32xbf16>,
    %c2 = arith.constant 2 : index
    %c0_48 = arith.constant 0 : index
    %c0_49 = arith.constant 0 : index
    %153 = vector.load %arg1[%c2, %c0_48, %c0_49] : memref<8x2x96xbf16, #tpu.memory_space<vmem>>, vector<1x2x96xbf16>
    %154 = vector.shape_cast %153 : vector<1x2x96xbf16> to vector<2x96xbf16>
    %155 = arith.truncf %114 : vector<2x32xf32> to vector<2x32xbf16>
    %cst_50 = arith.constant dense<0.000000e+00> : vector<2x96xf32>
    %156 = tpu.matmul %155, %4, %cst_50 {dimension_numbers = #tpu.dot_dimension_numbers<[1], [0], [0], [1], [0, 0, 1, 1], [], []>} : vector<2x32xbf16>, vector<32x96xbf16>, vector<2x96xf32> -> vector<2x96xf32>
    %157 = arith.extf %154 : vector<2x96xbf16> to vector<2x96xf32>
    %158 = vector.extract_strided_slice %157 {offsets = [0, 0], sizes = [2, 32], strides = [1, 1]} : vector<2x96xf32> to vector<2x32xf32>
    %159 = vector.extract_strided_slice %156 {offsets = [0, 0], sizes = [2, 32], strides = [1, 1]} : vector<2x96xf32> to vector<2x32xf32>
    %160 = arith.addf %158, %159 : vector<2x32xf32>
    %161 = arith.negf %160 : vector<2x32xf32>
    %162 = math.exp %161 : vector<2x32xf32>
    %cst_51 = arith.constant 1.000000e+00 : f32
    %163 = vector.broadcast %cst_51 : f32 to vector<2x32xf32>
    %164 = arith.addf %163, %162 : vector<2x32xf32>
    %165 = arith.divf %163, %164 : vector<2x32xf32>
    %166 = vector.extract_strided_slice %157 {offsets = [0, 32], sizes = [2, 32], strides = [1, 1]} : vector<2x96xf32> to vector<2x32xf32>
    %167 = vector.extract_strided_slice %156 {offsets = [0, 32], sizes = [2, 32], strides = [1, 1]} : vector<2x96xf32> to vector<2x32xf32>
    %168 = arith.addf %166, %167 : vector<2x32xf32>
    %169 = arith.negf %168 : vector<2x32xf32>
    %170 = math.exp %169 : vector<2x32xf32>
    %cst_52 = arith.constant 1.000000e+00 : f32
    %171 = vector.broadcast %cst_52 : f32 to vector<2x32xf32>
    %172 = arith.addf %171, %170 : vector<2x32xf32>
    %173 = arith.divf %171, %172 : vector<2x32xf32>
    %174 = vector.extract_strided_slice %157 {offsets = [0, 64], sizes = [2, 32], strides = [1, 1]} : vector<2x96xf32> to vector<2x32xf32>
    %175 = vector.extract_strided_slice %156 {offsets = [0, 64], sizes = [2, 32], strides = [1, 1]} : vector<2x96xf32> to vector<2x32xf32>
    %176 = arith.addf %175, %10 : vector<2x32xf32>
    %177 = arith.mulf %165, %176 : vector<2x32xf32>
    %178 = arith.addf %174, %177 : vector<2x32xf32>
    %179 = math.tanh %178 : vector<2x32xf32>
    %180 = arith.subf %114, %179 : vector<2x32xf32>
    %181 = arith.mulf %173, %180 : vector<2x32xf32>
    %182 = arith.addf %179, %181 : vector<2x32xf32>
    %183 = arith.truncf %182 : vector<2x32xf32> to vector<2x32xbf16>
    %c2_53 = arith.constant 2 : index
    %c0_54 = arith.constant 0 : index
    %c0_55 = arith.constant 0 : index
    %184 = vector.load %arg6[%c2_53, %c0_54, %c0_55] : memref<8x2x32xbf16, #tpu.memory_space<vmem>>, vector<1x2x32xbf16>
    %185 = vector.shape_cast %184 : vector<1x2x32xbf16> to vector<2x32xbf16>
    %186 = vector.shape_cast %183 : vector<2x32xbf16> to vector<1x2x32xbf16>
    tpu.vector_store %arg6[%c2_53, %c0_54, %c0_55], %186 {strides = array<i32>} : memref<8x2x32xbf16, #tpu.memory_space<vmem>>, vector<1x2x32xbf16>,
    %c5 = arith.constant 5 : index
    %c0_56 = arith.constant 0 : index
    %c0_57 = arith.constant 0 : index
    %187 = vector.load %arg2[%c5, %c0_56, %c0_57] : memref<8x2x96xbf16, #tpu.memory_space<vmem>>, vector<1x2x96xbf16>
    %188 = vector.shape_cast %187 : vector<1x2x96xbf16> to vector<2x96xbf16>
    %189 = arith.truncf %148 : vector<2x32xf32> to vector<2x32xbf16>
    %cst_58 = arith.constant dense<0.000000e+00> : vector<2x96xf32>
    %190 = tpu.matmul %189, %6, %cst_58 {dimension_numbers = #tpu.dot_dimension_numbers<[1], [0], [0], [1], [0, 0, 1, 1], [], []>} : vector<2x32xbf16>, vector<32x96xbf16>, vector<2x96xf32> -> vector<2x96xf32>
    %191 = arith.extf %188 : vector<2x96xbf16> to vector<2x96xf32>
    %192 = vector.extract_strided_slice %191 {offsets = [0, 0], sizes = [2, 32], strides = [1, 1]} : vector<2x96xf32> to vector<2x32xf32>
    %193 = vector.extract_strided_slice %190 {offsets = [0, 0], sizes = [2, 32], strides = [1, 1]} : vector<2x96xf32> to vector<2x32xf32>
    %194 = arith.addf %192, %193 : vector<2x32xf32>
    %195 = arith.negf %194 : vector<2x32xf32>
    %196 = math.exp %195 : vector<2x32xf32>
    %cst_59 = arith.constant 1.000000e+00 : f32
    %197 = vector.broadcast %cst_59 : f32 to vector<2x32xf32>
    %198 = arith.addf %197, %196 : vector<2x32xf32>
    %199 = arith.divf %197, %198 : vector<2x32xf32>
    %200 = vector.extract_strided_slice %191 {offsets = [0, 32], sizes = [2, 32], strides = [1, 1]} : vector<2x96xf32> to vector<2x32xf32>
    %201 = vector.extract_strided_slice %190 {offsets = [0, 32], sizes = [2, 32], strides = [1, 1]} : vector<2x96xf32> to vector<2x32xf32>
    %202 = arith.addf %200, %201 : vector<2x32xf32>
    %203 = arith.negf %202 : vector<2x32xf32>
    %204 = math.exp %203 : vector<2x32xf32>
    %cst_60 = arith.constant 1.000000e+00 : f32
    %205 = vector.broadcast %cst_60 : f32 to vector<2x32xf32>
    %206 = arith.addf %205, %204 : vector<2x32xf32>
    %207 = arith.divf %205, %206 : vector<2x32xf32>
    %208 = vector.extract_strided_slice %191 {offsets = [0, 64], sizes = [2, 32], strides = [1, 1]} : vector<2x96xf32> to vector<2x32xf32>
    %209 = vector.extract_strided_slice %190 {offsets = [0, 64], sizes = [2, 32], strides = [1, 1]} : vector<2x96xf32> to vector<2x32xf32>
    %210 = arith.addf %209, %14 : vector<2x32xf32>
    %211 = arith.mulf %199, %210 : vector<2x32xf32>
    %212 = arith.addf %208, %211 : vector<2x32xf32>
    %213 = math.tanh %212 : vector<2x32xf32>
    %214 = arith.subf %148, %213 : vector<2x32xf32>
    %215 = arith.mulf %207, %214 : vector<2x32xf32>
    %216 = arith.addf %213, %215 : vector<2x32xf32>
    %217 = arith.truncf %216 : vector<2x32xf32> to vector<2x32xbf16>
    %c5_61 = arith.constant 5 : index
    %c0_62 = arith.constant 0 : index
    %c0_63 = arith.constant 0 : index
    %218 = vector.load %arg7[%c5_61, %c0_62, %c0_63] : memref<8x2x32xbf16, #tpu.memory_space<vmem>>, vector<1x2x32xbf16>
    %219 = vector.shape_cast %218 : vector<1x2x32xbf16> to vector<2x32xbf16>
    %220 = vector.shape_cast %217 : vector<2x32xbf16> to vector<1x2x32xbf16>
    tpu.vector_store %arg7[%c5_61, %c0_62, %c0_63], %220 {strides = array<i32>} : memref<8x2x32xbf16, #tpu.memory_space<vmem>>, vector<1x2x32xbf16>,
    %c3 = arith.constant 3 : index
    %c0_64 = arith.constant 0 : index
    %c0_65 = arith.constant 0 : index
    %221 = vector.load %arg1[%c3, %c0_64, %c0_65] : memref<8x2x96xbf16, #tpu.memory_space<vmem>>, vector<1x2x96xbf16>
    %222 = vector.shape_cast %221 : vector<1x2x96xbf16> to vector<2x96xbf16>
    %223 = arith.truncf %182 : vector<2x32xf32> to vector<2x32xbf16>
    %cst_66 = arith.constant dense<0.000000e+00> : vector<2x96xf32>
    %224 = tpu.matmul %223, %4, %cst_66 {dimension_numbers = #tpu.dot_dimension_numbers<[1], [0], [0], [1], [0, 0, 1, 1], [], []>} : vector<2x32xbf16>, vector<32x96xbf16>, vector<2x96xf32> -> vector<2x96xf32>
    %225 = arith.extf %222 : vector<2x96xbf16> to vector<2x96xf32>
    %226 = vector.extract_strided_slice %225 {offsets = [0, 0], sizes = [2, 32], strides = [1, 1]} : vector<2x96xf32> to vector<2x32xf32>
    %227 = vector.extract_strided_slice %224 {offsets = [0, 0], sizes = [2, 32], strides = [1, 1]} : vector<2x96xf32> to vector<2x32xf32>
    %228 = arith.addf %226, %227 : vector<2x32xf32>
    %229 = arith.negf %228 : vector<2x32xf32>
    %230 = math.exp %229 : vector<2x32xf32>
    %cst_67 = arith.constant 1.000000e+00 : f32
    %231 = vector.broadcast %cst_67 : f32 to vector<2x32xf32>
    %232 = arith.addf %231, %230 : vector<2x32xf32>
    %233 = arith.divf %231, %232 : vector<2x32xf32>
    %234 = vector.extract_strided_slice %225 {offsets = [0, 32], sizes = [2, 32], strides = [1, 1]} : vector<2x96xf32> to vector<2x32xf32>
    %235 = vector.extract_strided_slice %224 {offsets = [0, 32], sizes = [2, 32], strides = [1, 1]} : vector<2x96xf32> to vector<2x32xf32>
    %236 = arith.addf %234, %235 : vector<2x32xf32>
    %237 = arith.negf %236 : vector<2x32xf32>
    %238 = math.exp %237 : vector<2x32xf32>
    %cst_68 = arith.constant 1.000000e+00 : f32
    %239 = vector.broadcast %cst_68 : f32 to vector<2x32xf32>
    %240 = arith.addf %239, %238 : vector<2x32xf32>
    %241 = arith.divf %239, %240 : vector<2x32xf32>
    %242 = vector.extract_strided_slice %225 {offsets = [0, 64], sizes = [2, 32], strides = [1, 1]} : vector<2x96xf32> to vector<2x32xf32>
    %243 = vector.extract_strided_slice %224 {offsets = [0, 64], sizes = [2, 32], strides = [1, 1]} : vector<2x96xf32> to vector<2x32xf32>
    %244 = arith.addf %243, %10 : vector<2x32xf32>
    %245 = arith.mulf %233, %244 : vector<2x32xf32>
    %246 = arith.addf %242, %245 : vector<2x32xf32>
    %247 = math.tanh %246 : vector<2x32xf32>
    %248 = arith.subf %182, %247 : vector<2x32xf32>
    %249 = arith.mulf %241, %248 : vector<2x32xf32>
    %250 = arith.addf %247, %249 : vector<2x32xf32>
    %251 = arith.truncf %250 : vector<2x32xf32> to vector<2x32xbf16>
    %c3_69 = arith.constant 3 : index
    %c0_70 = arith.constant 0 : index
    %c0_71 = arith.constant 0 : index
    %252 = vector.load %arg6[%c3_69, %c0_70, %c0_71] : memref<8x2x32xbf16, #tpu.memory_space<vmem>>, vector<1x2x32xbf16>
    %253 = vector.shape_cast %252 : vector<1x2x32xbf16> to vector<2x32xbf16>
    %254 = vector.shape_cast %251 : vector<2x32xbf16> to vector<1x2x32xbf16>
    tpu.vector_store %arg6[%c3_69, %c0_70, %c0_71], %254 {strides = array<i32>} : memref<8x2x32xbf16, #tpu.memory_space<vmem>>, vector<1x2x32xbf16>,
    %c4 = arith.constant 4 : index
    %c0_72 = arith.constant 0 : index
    %c0_73 = arith.constant 0 : index
    %255 = vector.load %arg2[%c4, %c0_72, %c0_73] : memref<8x2x96xbf16, #tpu.memory_space<vmem>>, vector<1x2x96xbf16>
    %256 = vector.shape_cast %255 : vector<1x2x96xbf16> to vector<2x96xbf16>
    %257 = arith.truncf %216 : vector<2x32xf32> to vector<2x32xbf16>
    %cst_74 = arith.constant dense<0.000000e+00> : vector<2x96xf32>
    %258 = tpu.matmul %257, %6, %cst_74 {dimension_numbers = #tpu.dot_dimension_numbers<[1], [0], [0], [1], [0, 0, 1, 1], [], []>} : vector<2x32xbf16>, vector<32x96xbf16>, vector<2x96xf32> -> vector<2x96xf32>
    %259 = arith.extf %256 : vector<2x96xbf16> to vector<2x96xf32>
    %260 = vector.extract_strided_slice %259 {offsets = [0, 0], sizes = [2, 32], strides = [1, 1]} : vector<2x96xf32> to vector<2x32xf32>
    %261 = vector.extract_strided_slice %258 {offsets = [0, 0], sizes = [2, 32], strides = [1, 1]} : vector<2x96xf32> to vector<2x32xf32>
    %262 = arith.addf %260, %261 : vector<2x32xf32>
    %263 = arith.negf %262 : vector<2x32xf32>
    %264 = math.exp %263 : vector<2x32xf32>
    %cst_75 = arith.constant 1.000000e+00 : f32
    %265 = vector.broadcast %cst_75 : f32 to vector<2x32xf32>
    %266 = arith.addf %265, %264 : vector<2x32xf32>
    %267 = arith.divf %265, %266 : vector<2x32xf32>
    %268 = vector.extract_strided_slice %259 {offsets = [0, 32], sizes = [2, 32], strides = [1, 1]} : vector<2x96xf32> to vector<2x32xf32>
    %269 = vector.extract_strided_slice %258 {offsets = [0, 32], sizes = [2, 32], strides = [1, 1]} : vector<2x96xf32> to vector<2x32xf32>
    %270 = arith.addf %268, %269 : vector<2x32xf32>
    %271 = arith.negf %270 : vector<2x32xf32>
    %272 = math.exp %271 : vector<2x32xf32>
    %cst_76 = arith.constant 1.000000e+00 : f32
    %273 = vector.broadcast %cst_76 : f32 to vector<2x32xf32>
    %274 = arith.addf %273, %272 : vector<2x32xf32>
    %275 = arith.divf %273, %274 : vector<2x32xf32>
    %276 = vector.extract_strided_slice %259 {offsets = [0, 64], sizes = [2, 32], strides = [1, 1]} : vector<2x96xf32> to vector<2x32xf32>
    %277 = vector.extract_strided_slice %258 {offsets = [0, 64], sizes = [2, 32], strides = [1, 1]} : vector<2x96xf32> to vector<2x32xf32>
    %278 = arith.addf %277, %14 : vector<2x32xf32>
    %279 = arith.mulf %267, %278 : vector<2x32xf32>
    %280 = arith.addf %276, %279 : vector<2x32xf32>
    %281 = math.tanh %280 : vector<2x32xf32>
    %282 = arith.subf %216, %281 : vector<2x32xf32>
    %283 = arith.mulf %275, %282 : vector<2x32xf32>
    %284 = arith.addf %281, %283 : vector<2x32xf32>
    %285 = arith.truncf %284 : vector<2x32xf32> to vector<2x32xbf16>
    %c4_77 = arith.constant 4 : index
    %c0_78 = arith.constant 0 : index
    %c0_79 = arith.constant 0 : index
    %286 = vector.load %arg7[%c4_77, %c0_78, %c0_79] : memref<8x2x32xbf16, #tpu.memory_space<vmem>>, vector<1x2x32xbf16>
    %287 = vector.shape_cast %286 : vector<1x2x32xbf16> to vector<2x32xbf16>
    %288 = vector.shape_cast %285 : vector<2x32xbf16> to vector<1x2x32xbf16>
    tpu.vector_store %arg7[%c4_77, %c0_78, %c0_79], %288 {strides = array<i32>} : memref<8x2x32xbf16, #tpu.memory_space<vmem>>, vector<1x2x32xbf16>,
    %c4_80 = arith.constant 4 : index
    %c0_81 = arith.constant 0 : index
    %c0_82 = arith.constant 0 : index
    %289 = vector.load %arg1[%c4_80, %c0_81, %c0_82] : memref<8x2x96xbf16, #tpu.memory_space<vmem>>, vector<1x2x96xbf16>
    %290 = vector.shape_cast %289 : vector<1x2x96xbf16> to vector<2x96xbf16>
    %291 = arith.truncf %250 : vector<2x32xf32> to vector<2x32xbf16>
    %cst_83 = arith.constant dense<0.000000e+00> : vector<2x96xf32>
    %292 = tpu.matmul %291, %4, %cst_83 {dimension_numbers = #tpu.dot_dimension_numbers<[1], [0], [0], [1], [0, 0, 1, 1], [], []>} : vector<2x32xbf16>, vector<32x96xbf16>, vector<2x96xf32> -> vector<2x96xf32>
    %293 = arith.extf %290 : vector<2x96xbf16> to vector<2x96xf32>
    %294 = vector.extract_strided_slice %293 {offsets = [0, 0], sizes = [2, 32], strides = [1, 1]} : vector<2x96xf32> to vector<2x32xf32>
    %295 = vector.extract_strided_slice %292 {offsets = [0, 0], sizes = [2, 32], strides = [1, 1]} : vector<2x96xf32> to vector<2x32xf32>
    %296 = arith.addf %294, %295 : vector<2x32xf32>
    %297 = arith.negf %296 : vector<2x32xf32>
    %298 = math.exp %297 : vector<2x32xf32>
    %cst_84 = arith.constant 1.000000e+00 : f32
    %299 = vector.broadcast %cst_84 : f32 to vector<2x32xf32>
    %300 = arith.addf %299, %298 : vector<2x32xf32>
    %301 = arith.divf %299, %300 : vector<2x32xf32>
    %302 = vector.extract_strided_slice %293 {offsets = [0, 32], sizes = [2, 32], strides = [1, 1]} : vector<2x96xf32> to vector<2x32xf32>
    %303 = vector.extract_strided_slice %292 {offsets = [0, 32], sizes = [2, 32], strides = [1, 1]} : vector<2x96xf32> to vector<2x32xf32>
    %304 = arith.addf %302, %303 : vector<2x32xf32>
    %305 = arith.negf %304 : vector<2x32xf32>
    %306 = math.exp %305 : vector<2x32xf32>
    %cst_85 = arith.constant 1.000000e+00 : f32
    %307 = vector.broadcast %cst_85 : f32 to vector<2x32xf32>
    %308 = arith.addf %307, %306 : vector<2x32xf32>
    %309 = arith.divf %307, %308 : vector<2x32xf32>
    %310 = vector.extract_strided_slice %293 {offsets = [0, 64], sizes = [2, 32], strides = [1, 1]} : vector<2x96xf32> to vector<2x32xf32>
    %311 = vector.extract_strided_slice %292 {offsets = [0, 64], sizes = [2, 32], strides = [1, 1]} : vector<2x96xf32> to vector<2x32xf32>
    %312 = arith.addf %311, %10 : vector<2x32xf32>
    %313 = arith.mulf %301, %312 : vector<2x32xf32>
    %314 = arith.addf %310, %313 : vector<2x32xf32>
    %315 = math.tanh %314 : vector<2x32xf32>
    %316 = arith.subf %250, %315 : vector<2x32xf32>
    %317 = arith.mulf %309, %316 : vector<2x32xf32>
    %318 = arith.addf %315, %317 : vector<2x32xf32>
    %319 = arith.truncf %318 : vector<2x32xf32> to vector<2x32xbf16>
    %c4_86 = arith.constant 4 : index
    %c0_87 = arith.constant 0 : index
    %c0_88 = arith.constant 0 : index
    %320 = vector.load %arg6[%c4_86, %c0_87, %c0_88] : memref<8x2x32xbf16, #tpu.memory_space<vmem>>, vector<1x2x32xbf16>
    %321 = vector.shape_cast %320 : vector<1x2x32xbf16> to vector<2x32xbf16>
    %322 = vector.shape_cast %319 : vector<2x32xbf16> to vector<1x2x32xbf16>
    tpu.vector_store %arg6[%c4_86, %c0_87, %c0_88], %322 {strides = array<i32>} : memref<8x2x32xbf16, #tpu.memory_space<vmem>>, vector<1x2x32xbf16>,
    %c3_89 = arith.constant 3 : index
    %c0_90 = arith.constant 0 : index
    %c0_91 = arith.constant 0 : index
    %323 = vector.load %arg2[%c3_89, %c0_90, %c0_91] : memref<8x2x96xbf16, #tpu.memory_space<vmem>>, vector<1x2x96xbf16>
    %324 = vector.shape_cast %323 : vector<1x2x96xbf16> to vector<2x96xbf16>
    %325 = arith.truncf %284 : vector<2x32xf32> to vector<2x32xbf16>
    %cst_92 = arith.constant dense<0.000000e+00> : vector<2x96xf32>
    %326 = tpu.matmul %325, %6, %cst_92 {dimension_numbers = #tpu.dot_dimension_numbers<[1], [0], [0], [1], [0, 0, 1, 1], [], []>} : vector<2x32xbf16>, vector<32x96xbf16>, vector<2x96xf32> -> vector<2x96xf32>
    %327 = arith.extf %324 : vector<2x96xbf16> to vector<2x96xf32>
    %328 = vector.extract_strided_slice %327 {offsets = [0, 0], sizes = [2, 32], strides = [1, 1]} : vector<2x96xf32> to vector<2x32xf32>
    %329 = vector.extract_strided_slice %326 {offsets = [0, 0], sizes = [2, 32], strides = [1, 1]} : vector<2x96xf32> to vector<2x32xf32>
    %330 = arith.addf %328, %329 : vector<2x32xf32>
    %331 = arith.negf %330 : vector<2x32xf32>
    %332 = math.exp %331 : vector<2x32xf32>
    %cst_93 = arith.constant 1.000000e+00 : f32
    %333 = vector.broadcast %cst_93 : f32 to vector<2x32xf32>
    %334 = arith.addf %333, %332 : vector<2x32xf32>
    %335 = arith.divf %333, %334 : vector<2x32xf32>
    %336 = vector.extract_strided_slice %327 {offsets = [0, 32], sizes = [2, 32], strides = [1, 1]} : vector<2x96xf32> to vector<2x32xf32>
    %337 = vector.extract_strided_slice %326 {offsets = [0, 32], sizes = [2, 32], strides = [1, 1]} : vector<2x96xf32> to vector<2x32xf32>
    %338 = arith.addf %336, %337 : vector<2x32xf32>
    %339 = arith.negf %338 : vector<2x32xf32>
    %340 = math.exp %339 : vector<2x32xf32>
    %cst_94 = arith.constant 1.000000e+00 : f32
    %341 = vector.broadcast %cst_94 : f32 to vector<2x32xf32>
    %342 = arith.addf %341, %340 : vector<2x32xf32>
    %343 = arith.divf %341, %342 : vector<2x32xf32>
    %344 = vector.extract_strided_slice %327 {offsets = [0, 64], sizes = [2, 32], strides = [1, 1]} : vector<2x96xf32> to vector<2x32xf32>
    %345 = vector.extract_strided_slice %326 {offsets = [0, 64], sizes = [2, 32], strides = [1, 1]} : vector<2x96xf32> to vector<2x32xf32>
    %346 = arith.addf %345, %14 : vector<2x32xf32>
    %347 = arith.mulf %335, %346 : vector<2x32xf32>
    %348 = arith.addf %344, %347 : vector<2x32xf32>
    %349 = math.tanh %348 : vector<2x32xf32>
    %350 = arith.subf %284, %349 : vector<2x32xf32>
    %351 = arith.mulf %343, %350 : vector<2x32xf32>
    %352 = arith.addf %349, %351 : vector<2x32xf32>
    %353 = arith.truncf %352 : vector<2x32xf32> to vector<2x32xbf16>
    %c3_95 = arith.constant 3 : index
    %c0_96 = arith.constant 0 : index
    %c0_97 = arith.constant 0 : index
    %354 = vector.load %arg7[%c3_95, %c0_96, %c0_97] : memref<8x2x32xbf16, #tpu.memory_space<vmem>>, vector<1x2x32xbf16>
    %355 = vector.shape_cast %354 : vector<1x2x32xbf16> to vector<2x32xbf16>
    %356 = vector.shape_cast %353 : vector<2x32xbf16> to vector<1x2x32xbf16>
    tpu.vector_store %arg7[%c3_95, %c0_96, %c0_97], %356 {strides = array<i32>} : memref<8x2x32xbf16, #tpu.memory_space<vmem>>, vector<1x2x32xbf16>,
    %c5_98 = arith.constant 5 : index
    %c0_99 = arith.constant 0 : index
    %c0_100 = arith.constant 0 : index
    %357 = vector.load %arg1[%c5_98, %c0_99, %c0_100] : memref<8x2x96xbf16, #tpu.memory_space<vmem>>, vector<1x2x96xbf16>
    %358 = vector.shape_cast %357 : vector<1x2x96xbf16> to vector<2x96xbf16>
    %359 = arith.truncf %318 : vector<2x32xf32> to vector<2x32xbf16>
    %cst_101 = arith.constant dense<0.000000e+00> : vector<2x96xf32>
    %360 = tpu.matmul %359, %4, %cst_101 {dimension_numbers = #tpu.dot_dimension_numbers<[1], [0], [0], [1], [0, 0, 1, 1], [], []>} : vector<2x32xbf16>, vector<32x96xbf16>, vector<2x96xf32> -> vector<2x96xf32>
    %361 = arith.extf %358 : vector<2x96xbf16> to vector<2x96xf32>
    %362 = vector.extract_strided_slice %361 {offsets = [0, 0], sizes = [2, 32], strides = [1, 1]} : vector<2x96xf32> to vector<2x32xf32>
    %363 = vector.extract_strided_slice %360 {offsets = [0, 0], sizes = [2, 32], strides = [1, 1]} : vector<2x96xf32> to vector<2x32xf32>
    %364 = arith.addf %362, %363 : vector<2x32xf32>
    %365 = arith.negf %364 : vector<2x32xf32>
    %366 = math.exp %365 : vector<2x32xf32>
    %cst_102 = arith.constant 1.000000e+00 : f32
    %367 = vector.broadcast %cst_102 : f32 to vector<2x32xf32>
    %368 = arith.addf %367, %366 : vector<2x32xf32>
    %369 = arith.divf %367, %368 : vector<2x32xf32>
    %370 = vector.extract_strided_slice %361 {offsets = [0, 32], sizes = [2, 32], strides = [1, 1]} : vector<2x96xf32> to vector<2x32xf32>
    %371 = vector.extract_strided_slice %360 {offsets = [0, 32], sizes = [2, 32], strides = [1, 1]} : vector<2x96xf32> to vector<2x32xf32>
    %372 = arith.addf %370, %371 : vector<2x32xf32>
    %373 = arith.negf %372 : vector<2x32xf32>
    %374 = math.exp %373 : vector<2x32xf32>
    %cst_103 = arith.constant 1.000000e+00 : f32
    %375 = vector.broadcast %cst_103 : f32 to vector<2x32xf32>
    %376 = arith.addf %375, %374 : vector<2x32xf32>
    %377 = arith.divf %375, %376 : vector<2x32xf32>
    %378 = vector.extract_strided_slice %361 {offsets = [0, 64], sizes = [2, 32], strides = [1, 1]} : vector<2x96xf32> to vector<2x32xf32>
    %379 = vector.extract_strided_slice %360 {offsets = [0, 64], sizes = [2, 32], strides = [1, 1]} : vector<2x96xf32> to vector<2x32xf32>
    %380 = arith.addf %379, %10 : vector<2x32xf32>
    %381 = arith.mulf %369, %380 : vector<2x32xf32>
    %382 = arith.addf %378, %381 : vector<2x32xf32>
    %383 = math.tanh %382 : vector<2x32xf32>
    %384 = arith.subf %318, %383 : vector<2x32xf32>
    %385 = arith.mulf %377, %384 : vector<2x32xf32>
    %386 = arith.addf %383, %385 : vector<2x32xf32>
    %387 = arith.truncf %386 : vector<2x32xf32> to vector<2x32xbf16>
    %c5_104 = arith.constant 5 : index
    %c0_105 = arith.constant 0 : index
    %c0_106 = arith.constant 0 : index
    %388 = vector.load %arg6[%c5_104, %c0_105, %c0_106] : memref<8x2x32xbf16, #tpu.memory_space<vmem>>, vector<1x2x32xbf16>
    %389 = vector.shape_cast %388 : vector<1x2x32xbf16> to vector<2x32xbf16>
    %390 = vector.shape_cast %387 : vector<2x32xbf16> to vector<1x2x32xbf16>
    tpu.vector_store %arg6[%c5_104, %c0_105, %c0_106], %390 {strides = array<i32>} : memref<8x2x32xbf16, #tpu.memory_space<vmem>>, vector<1x2x32xbf16>,
    %c2_107 = arith.constant 2 : index
    %c0_108 = arith.constant 0 : index
    %c0_109 = arith.constant 0 : index
    %391 = vector.load %arg2[%c2_107, %c0_108, %c0_109] : memref<8x2x96xbf16, #tpu.memory_space<vmem>>, vector<1x2x96xbf16>
    %392 = vector.shape_cast %391 : vector<1x2x96xbf16> to vector<2x96xbf16>
    %393 = arith.truncf %352 : vector<2x32xf32> to vector<2x32xbf16>
    %cst_110 = arith.constant dense<0.000000e+00> : vector<2x96xf32>
    %394 = tpu.matmul %393, %6, %cst_110 {dimension_numbers = #tpu.dot_dimension_numbers<[1], [0], [0], [1], [0, 0, 1, 1], [], []>} : vector<2x32xbf16>, vector<32x96xbf16>, vector<2x96xf32> -> vector<2x96xf32>
    %395 = arith.extf %392 : vector<2x96xbf16> to vector<2x96xf32>
    %396 = vector.extract_strided_slice %395 {offsets = [0, 0], sizes = [2, 32], strides = [1, 1]} : vector<2x96xf32> to vector<2x32xf32>
    %397 = vector.extract_strided_slice %394 {offsets = [0, 0], sizes = [2, 32], strides = [1, 1]} : vector<2x96xf32> to vector<2x32xf32>
    %398 = arith.addf %396, %397 : vector<2x32xf32>
    %399 = arith.negf %398 : vector<2x32xf32>
    %400 = math.exp %399 : vector<2x32xf32>
    %cst_111 = arith.constant 1.000000e+00 : f32
    %401 = vector.broadcast %cst_111 : f32 to vector<2x32xf32>
    %402 = arith.addf %401, %400 : vector<2x32xf32>
    %403 = arith.divf %401, %402 : vector<2x32xf32>
    %404 = vector.extract_strided_slice %395 {offsets = [0, 32], sizes = [2, 32], strides = [1, 1]} : vector<2x96xf32> to vector<2x32xf32>
    %405 = vector.extract_strided_slice %394 {offsets = [0, 32], sizes = [2, 32], strides = [1, 1]} : vector<2x96xf32> to vector<2x32xf32>
    %406 = arith.addf %404, %405 : vector<2x32xf32>
    %407 = arith.negf %406 : vector<2x32xf32>
    %408 = math.exp %407 : vector<2x32xf32>
    %cst_112 = arith.constant 1.000000e+00 : f32
    %409 = vector.broadcast %cst_112 : f32 to vector<2x32xf32>
    %410 = arith.addf %409, %408 : vector<2x32xf32>
    %411 = arith.divf %409, %410 : vector<2x32xf32>
    %412 = vector.extract_strided_slice %395 {offsets = [0, 64], sizes = [2, 32], strides = [1, 1]} : vector<2x96xf32> to vector<2x32xf32>
    %413 = vector.extract_strided_slice %394 {offsets = [0, 64], sizes = [2, 32], strides = [1, 1]} : vector<2x96xf32> to vector<2x32xf32>
    %414 = arith.addf %413, %14 : vector<2x32xf32>
    %415 = arith.mulf %403, %414 : vector<2x32xf32>
    %416 = arith.addf %412, %415 : vector<2x32xf32>
    %417 = math.tanh %416 : vector<2x32xf32>
    %418 = arith.subf %352, %417 : vector<2x32xf32>
    %419 = arith.mulf %411, %418 : vector<2x32xf32>
    %420 = arith.addf %417, %419 : vector<2x32xf32>
    %421 = arith.truncf %420 : vector<2x32xf32> to vector<2x32xbf16>
    %c2_113 = arith.constant 2 : index
    %c0_114 = arith.constant 0 : index
    %c0_115 = arith.constant 0 : index
    %422 = vector.load %arg7[%c2_113, %c0_114, %c0_115] : memref<8x2x32xbf16, #tpu.memory_space<vmem>>, vector<1x2x32xbf16>
    %423 = vector.shape_cast %422 : vector<1x2x32xbf16> to vector<2x32xbf16>
    %424 = vector.shape_cast %421 : vector<2x32xbf16> to vector<1x2x32xbf16>
    tpu.vector_store %arg7[%c2_113, %c0_114, %c0_115], %424 {strides = array<i32>} : memref<8x2x32xbf16, #tpu.memory_space<vmem>>, vector<1x2x32xbf16>,
    %c6_116 = arith.constant 6 : index
    %c0_117 = arith.constant 0 : index
    %c0_118 = arith.constant 0 : index
    %425 = vector.load %arg1[%c6_116, %c0_117, %c0_118] : memref<8x2x96xbf16, #tpu.memory_space<vmem>>, vector<1x2x96xbf16>
    %426 = vector.shape_cast %425 : vector<1x2x96xbf16> to vector<2x96xbf16>
    %427 = arith.truncf %386 : vector<2x32xf32> to vector<2x32xbf16>
    %cst_119 = arith.constant dense<0.000000e+00> : vector<2x96xf32>
    %428 = tpu.matmul %427, %4, %cst_119 {dimension_numbers = #tpu.dot_dimension_numbers<[1], [0], [0], [1], [0, 0, 1, 1], [], []>} : vector<2x32xbf16>, vector<32x96xbf16>, vector<2x96xf32> -> vector<2x96xf32>
    %429 = arith.extf %426 : vector<2x96xbf16> to vector<2x96xf32>
    %430 = vector.extract_strided_slice %429 {offsets = [0, 0], sizes = [2, 32], strides = [1, 1]} : vector<2x96xf32> to vector<2x32xf32>
    %431 = vector.extract_strided_slice %428 {offsets = [0, 0], sizes = [2, 32], strides = [1, 1]} : vector<2x96xf32> to vector<2x32xf32>
    %432 = arith.addf %430, %431 : vector<2x32xf32>
    %433 = arith.negf %432 : vector<2x32xf32>
    %434 = math.exp %433 : vector<2x32xf32>
    %cst_120 = arith.constant 1.000000e+00 : f32
    %435 = vector.broadcast %cst_120 : f32 to vector<2x32xf32>
    %436 = arith.addf %435, %434 : vector<2x32xf32>
    %437 = arith.divf %435, %436 : vector<2x32xf32>
    %438 = vector.extract_strided_slice %429 {offsets = [0, 32], sizes = [2, 32], strides = [1, 1]} : vector<2x96xf32> to vector<2x32xf32>
    %439 = vector.extract_strided_slice %428 {offsets = [0, 32], sizes = [2, 32], strides = [1, 1]} : vector<2x96xf32> to vector<2x32xf32>
    %440 = arith.addf %438, %439 : vector<2x32xf32>
    %441 = arith.negf %440 : vector<2x32xf32>
    %442 = math.exp %441 : vector<2x32xf32>
    %cst_121 = arith.constant 1.000000e+00 : f32
    %443 = vector.broadcast %cst_121 : f32 to vector<2x32xf32>
    %444 = arith.addf %443, %442 : vector<2x32xf32>
    %445 = arith.divf %443, %444 : vector<2x32xf32>
    %446 = vector.extract_strided_slice %429 {offsets = [0, 64], sizes = [2, 32], strides = [1, 1]} : vector<2x96xf32> to vector<2x32xf32>
    %447 = vector.extract_strided_slice %428 {offsets = [0, 64], sizes = [2, 32], strides = [1, 1]} : vector<2x96xf32> to vector<2x32xf32>
    %448 = arith.addf %447, %10 : vector<2x32xf32>
    %449 = arith.mulf %437, %448 : vector<2x32xf32>
    %450 = arith.addf %446, %449 : vector<2x32xf32>
    %451 = math.tanh %450 : vector<2x32xf32>
    %452 = arith.subf %386, %451 : vector<2x32xf32>
    %453 = arith.mulf %445, %452 : vector<2x32xf32>
    %454 = arith.addf %451, %453 : vector<2x32xf32>
    %455 = arith.truncf %454 : vector<2x32xf32> to vector<2x32xbf16>
    %c6_122 = arith.constant 6 : index
    %c0_123 = arith.constant 0 : index
    %c0_124 = arith.constant 0 : index
    %456 = vector.load %arg6[%c6_122, %c0_123, %c0_124] : memref<8x2x32xbf16, #tpu.memory_space<vmem>>, vector<1x2x32xbf16>
    %457 = vector.shape_cast %456 : vector<1x2x32xbf16> to vector<2x32xbf16>
    %458 = vector.shape_cast %455 : vector<2x32xbf16> to vector<1x2x32xbf16>
    tpu.vector_store %arg6[%c6_122, %c0_123, %c0_124], %458 {strides = array<i32>} : memref<8x2x32xbf16, #tpu.memory_space<vmem>>, vector<1x2x32xbf16>,
    %c1_125 = arith.constant 1 : index
    %c0_126 = arith.constant 0 : index
    %c0_127 = arith.constant 0 : index
    %459 = vector.load %arg2[%c1_125, %c0_126, %c0_127] : memref<8x2x96xbf16, #tpu.memory_space<vmem>>, vector<1x2x96xbf16>
    %460 = vector.shape_cast %459 : vector<1x2x96xbf16> to vector<2x96xbf16>
    %461 = arith.truncf %420 : vector<2x32xf32> to vector<2x32xbf16>
    %cst_128 = arith.constant dense<0.000000e+00> : vector<2x96xf32>
    %462 = tpu.matmul %461, %6, %cst_128 {dimension_numbers = #tpu.dot_dimension_numbers<[1], [0], [0], [1], [0, 0, 1, 1], [], []>} : vector<2x32xbf16>, vector<32x96xbf16>, vector<2x96xf32> -> vector<2x96xf32>
    %463 = arith.extf %460 : vector<2x96xbf16> to vector<2x96xf32>
    %464 = vector.extract_strided_slice %463 {offsets = [0, 0], sizes = [2, 32], strides = [1, 1]} : vector<2x96xf32> to vector<2x32xf32>
    %465 = vector.extract_strided_slice %462 {offsets = [0, 0], sizes = [2, 32], strides = [1, 1]} : vector<2x96xf32> to vector<2x32xf32>
    %466 = arith.addf %464, %465 : vector<2x32xf32>
    %467 = arith.negf %466 : vector<2x32xf32>
    %468 = math.exp %467 : vector<2x32xf32>
    %cst_129 = arith.constant 1.000000e+00 : f32
    %469 = vector.broadcast %cst_129 : f32 to vector<2x32xf32>
    %470 = arith.addf %469, %468 : vector<2x32xf32>
    %471 = arith.divf %469, %470 : vector<2x32xf32>
    %472 = vector.extract_strided_slice %463 {offsets = [0, 32], sizes = [2, 32], strides = [1, 1]} : vector<2x96xf32> to vector<2x32xf32>
    %473 = vector.extract_strided_slice %462 {offsets = [0, 32], sizes = [2, 32], strides = [1, 1]} : vector<2x96xf32> to vector<2x32xf32>
    %474 = arith.addf %472, %473 : vector<2x32xf32>
    %475 = arith.negf %474 : vector<2x32xf32>
    %476 = math.exp %475 : vector<2x32xf32>
    %cst_130 = arith.constant 1.000000e+00 : f32
    %477 = vector.broadcast %cst_130 : f32 to vector<2x32xf32>
    %478 = arith.addf %477, %476 : vector<2x32xf32>
    %479 = arith.divf %477, %478 : vector<2x32xf32>
    %480 = vector.extract_strided_slice %463 {offsets = [0, 64], sizes = [2, 32], strides = [1, 1]} : vector<2x96xf32> to vector<2x32xf32>
    %481 = vector.extract_strided_slice %462 {offsets = [0, 64], sizes = [2, 32], strides = [1, 1]} : vector<2x96xf32> to vector<2x32xf32>
    %482 = arith.addf %481, %14 : vector<2x32xf32>
    %483 = arith.mulf %471, %482 : vector<2x32xf32>
    %484 = arith.addf %480, %483 : vector<2x32xf32>
    %485 = math.tanh %484 : vector<2x32xf32>
    %486 = arith.subf %420, %485 : vector<2x32xf32>
    %487 = arith.mulf %479, %486 : vector<2x32xf32>
    %488 = arith.addf %485, %487 : vector<2x32xf32>
    %489 = arith.truncf %488 : vector<2x32xf32> to vector<2x32xbf16>
    %c1_131 = arith.constant 1 : index
    %c0_132 = arith.constant 0 : index
    %c0_133 = arith.constant 0 : index
    %490 = vector.load %arg7[%c1_131, %c0_132, %c0_133] : memref<8x2x32xbf16, #tpu.memory_space<vmem>>, vector<1x2x32xbf16>
    %491 = vector.shape_cast %490 : vector<1x2x32xbf16> to vector<2x32xbf16>
    %492 = vector.shape_cast %489 : vector<2x32xbf16> to vector<1x2x32xbf16>
    tpu.vector_store %arg7[%c1_131, %c0_132, %c0_133], %492 {strides = array<i32>} : memref<8x2x32xbf16, #tpu.memory_space<vmem>>, vector<1x2x32xbf16>,
    %c7_134 = arith.constant 7 : index
    %c0_135 = arith.constant 0 : index
    %c0_136 = arith.constant 0 : index
    %493 = vector.load %arg1[%c7_134, %c0_135, %c0_136] : memref<8x2x96xbf16, #tpu.memory_space<vmem>>, vector<1x2x96xbf16>
    %494 = vector.shape_cast %493 : vector<1x2x96xbf16> to vector<2x96xbf16>
    %495 = arith.truncf %454 : vector<2x32xf32> to vector<2x32xbf16>
    %cst_137 = arith.constant dense<0.000000e+00> : vector<2x96xf32>
    %496 = tpu.matmul %495, %4, %cst_137 {dimension_numbers = #tpu.dot_dimension_numbers<[1], [0], [0], [1], [0, 0, 1, 1], [], []>} : vector<2x32xbf16>, vector<32x96xbf16>, vector<2x96xf32> -> vector<2x96xf32>
    %497 = arith.extf %494 : vector<2x96xbf16> to vector<2x96xf32>
    %498 = vector.extract_strided_slice %497 {offsets = [0, 0], sizes = [2, 32], strides = [1, 1]} : vector<2x96xf32> to vector<2x32xf32>
    %499 = vector.extract_strided_slice %496 {offsets = [0, 0], sizes = [2, 32], strides = [1, 1]} : vector<2x96xf32> to vector<2x32xf32>
    %500 = arith.addf %498, %499 : vector<2x32xf32>
    %501 = arith.negf %500 : vector<2x32xf32>
    %502 = math.exp %501 : vector<2x32xf32>
    %cst_138 = arith.constant 1.000000e+00 : f32
    %503 = vector.broadcast %cst_138 : f32 to vector<2x32xf32>
    %504 = arith.addf %503, %502 : vector<2x32xf32>
    %505 = arith.divf %503, %504 : vector<2x32xf32>
    %506 = vector.extract_strided_slice %497 {offsets = [0, 32], sizes = [2, 32], strides = [1, 1]} : vector<2x96xf32> to vector<2x32xf32>
    %507 = vector.extract_strided_slice %496 {offsets = [0, 32], sizes = [2, 32], strides = [1, 1]} : vector<2x96xf32> to vector<2x32xf32>
    %508 = arith.addf %506, %507 : vector<2x32xf32>
    %509 = arith.negf %508 : vector<2x32xf32>
    %510 = math.exp %509 : vector<2x32xf32>
    %cst_139 = arith.constant 1.000000e+00 : f32
    %511 = vector.broadcast %cst_139 : f32 to vector<2x32xf32>
    %512 = arith.addf %511, %510 : vector<2x32xf32>
    %513 = arith.divf %511, %512 : vector<2x32xf32>
    %514 = vector.extract_strided_slice %497 {offsets = [0, 64], sizes = [2, 32], strides = [1, 1]} : vector<2x96xf32> to vector<2x32xf32>
    %515 = vector.extract_strided_slice %496 {offsets = [0, 64], sizes = [2, 32], strides = [1, 1]} : vector<2x96xf32> to vector<2x32xf32>
    %516 = arith.addf %515, %10 : vector<2x32xf32>
    %517 = arith.mulf %505, %516 : vector<2x32xf32>
    %518 = arith.addf %514, %517 : vector<2x32xf32>
    %519 = math.tanh %518 : vector<2x32xf32>
    %520 = arith.subf %454, %519 : vector<2x32xf32>
    %521 = arith.mulf %513, %520 : vector<2x32xf32>
    %522 = arith.addf %519, %521 : vector<2x32xf32>
    %523 = arith.truncf %522 : vector<2x32xf32> to vector<2x32xbf16>
    %c7_140 = arith.constant 7 : index
    %c0_141 = arith.constant 0 : index
    %c0_142 = arith.constant 0 : index
    %524 = vector.load %arg6[%c7_140, %c0_141, %c0_142] : memref<8x2x32xbf16, #tpu.memory_space<vmem>>, vector<1x2x32xbf16>
    %525 = vector.shape_cast %524 : vector<1x2x32xbf16> to vector<2x32xbf16>
    %526 = vector.shape_cast %523 : vector<2x32xbf16> to vector<1x2x32xbf16>
    tpu.vector_store %arg6[%c7_140, %c0_141, %c0_142], %526 {strides = array<i32>} : memref<8x2x32xbf16, #tpu.memory_space<vmem>>, vector<1x2x32xbf16>,
    %c0_143 = arith.constant 0 : index
    %c0_144 = arith.constant 0 : index
    %c0_145 = arith.constant 0 : index
    %527 = vector.load %arg2[%c0_143, %c0_144, %c0_145] : memref<8x2x96xbf16, #tpu.memory_space<vmem>>, vector<1x2x96xbf16>
    %528 = vector.shape_cast %527 : vector<1x2x96xbf16> to vector<2x96xbf16>
    %529 = arith.truncf %488 : vector<2x32xf32> to vector<2x32xbf16>
    %cst_146 = arith.constant dense<0.000000e+00> : vector<2x96xf32>
    %530 = tpu.matmul %529, %6, %cst_146 {dimension_numbers = #tpu.dot_dimension_numbers<[1], [0], [0], [1], [0, 0, 1, 1], [], []>} : vector<2x32xbf16>, vector<32x96xbf16>, vector<2x96xf32> -> vector<2x96xf32>
    %531 = arith.extf %528 : vector<2x96xbf16> to vector<2x96xf32>
    %532 = vector.extract_strided_slice %531 {offsets = [0, 0], sizes = [2, 32], strides = [1, 1]} : vector<2x96xf32> to vector<2x32xf32>
    %533 = vector.extract_strided_slice %530 {offsets = [0, 0], sizes = [2, 32], strides = [1, 1]} : vector<2x96xf32> to vector<2x32xf32>
    %534 = arith.addf %532, %533 : vector<2x32xf32>
    %535 = arith.negf %534 : vector<2x32xf32>
    %536 = math.exp %535 : vector<2x32xf32>
    %cst_147 = arith.constant 1.000000e+00 : f32
    %537 = vector.broadcast %cst_147 : f32 to vector<2x32xf32>
    %538 = arith.addf %537, %536 : vector<2x32xf32>
    %539 = arith.divf %537, %538 : vector<2x32xf32>
    %540 = vector.extract_strided_slice %531 {offsets = [0, 32], sizes = [2, 32], strides = [1, 1]} : vector<2x96xf32> to vector<2x32xf32>
    %541 = vector.extract_strided_slice %530 {offsets = [0, 32], sizes = [2, 32], strides = [1, 1]} : vector<2x96xf32> to vector<2x32xf32>
    %542 = arith.addf %540, %541 : vector<2x32xf32>
    %543 = arith.negf %542 : vector<2x32xf32>
    %544 = math.exp %543 : vector<2x32xf32>
    %cst_148 = arith.constant 1.000000e+00 : f32
    %545 = vector.broadcast %cst_148 : f32 to vector<2x32xf32>
    %546 = arith.addf %545, %544 : vector<2x32xf32>
    %547 = arith.divf %545, %546 : vector<2x32xf32>
    %548 = vector.extract_strided_slice %531 {offsets = [0, 64], sizes = [2, 32], strides = [1, 1]} : vector<2x96xf32> to vector<2x32xf32>
    %549 = vector.extract_strided_slice %530 {offsets = [0, 64], sizes = [2, 32], strides = [1, 1]} : vector<2x96xf32> to vector<2x32xf32>
    %550 = arith.addf %549, %14 : vector<2x32xf32>
    %551 = arith.mulf %539, %550 : vector<2x32xf32>
    %552 = arith.addf %548, %551 : vector<2x32xf32>
    %553 = math.tanh %552 : vector<2x32xf32>
    %554 = arith.subf %488, %553 : vector<2x32xf32>
    %555 = arith.mulf %547, %554 : vector<2x32xf32>
    %556 = arith.addf %553, %555 : vector<2x32xf32>
    %557 = arith.truncf %556 : vector<2x32xf32> to vector<2x32xbf16>
    %c0_149 = arith.constant 0 : index
    %c0_150 = arith.constant 0 : index
    %c0_151 = arith.constant 0 : index
    %558 = vector.load %arg7[%c0_149, %c0_150, %c0_151] : memref<8x2x32xbf16, #tpu.memory_space<vmem>>, vector<1x2x32xbf16>
    %559 = vector.shape_cast %558 : vector<1x2x32xbf16> to vector<2x32xbf16>
    %560 = vector.shape_cast %557 : vector<2x32xbf16> to vector<1x2x32xbf16>
    tpu.vector_store %arg7[%c0_149, %c0_150, %c0_151], %560 {strides = array<i32>} : memref<8x2x32xbf16, #tpu.memory_space<vmem>>, vector<1x2x32xbf16>,
    %c0_152 = arith.constant 0 : index
    %c0_153 = arith.constant 0 : index
    %561 = vector.load %arg9[%c0_152, %c0_153] : memref<2x32xf32, #tpu.memory_space<vmem>>, vector<2x32xf32>
    tpu.vector_store %arg9[%c0_152, %c0_153], %522 {strides = array<i32>} : memref<2x32xf32, #tpu.memory_space<vmem>>, vector<2x32xf32>,
    %c0_154 = arith.constant 0 : index
    %c0_155 = arith.constant 0 : index
    %562 = vector.load %arg10[%c0_154, %c0_155] : memref<2x32xf32, #tpu.memory_space<vmem>>, vector<2x32xf32>
    tpu.vector_store %arg10[%c0_154, %c0_155], %556 {strides = array<i32>} : memref<2x32xf32, #tpu.memory_space<vmem>>, vector<2x32xf32>,
    %c0_i32_156 = arith.constant 0 : i32
    %563 = arith.cmpi eq, %arg0, %c0_i32_156 : i32
    %564 = arith.extui %563 : i1 to i32
    %c0_i32_157 = arith.constant 0 : i32
    %565 = arith.cmpi ne, %564, %c0_i32_157 : i32
    scf.if %565 {
      %c0_158 = arith.constant 0 : index
      %c0_159 = arith.constant 0 : index
      %566 = vector.load %arg9[%c0_158, %c0_159] : memref<2x32xf32, #tpu.memory_space<vmem>>, vector<2x32xf32>
      %c0_160 = arith.constant 0 : index
      %c0_161 = arith.constant 0 : index
      %c0_162 = arith.constant 0 : index
      %567 = vector.load %arg8[%c0_160, %c0_161, %c0_162] : memref<2x2x32xf32, #tpu.memory_space<vmem>>, vector<1x2x32xf32>
      %568 = vector.shape_cast %567 : vector<1x2x32xf32> to vector<2x32xf32>
      %569 = vector.shape_cast %566 : vector<2x32xf32> to vector<1x2x32xf32>
      tpu.vector_store %arg8[%c0_160, %c0_161, %c0_162], %569 {strides = array<i32>} : memref<2x2x32xf32, #tpu.memory_space<vmem>>, vector<1x2x32xf32>,
      %c0_163 = arith.constant 0 : index
      %c0_164 = arith.constant 0 : index
      %570 = vector.load %arg10[%c0_163, %c0_164] : memref<2x32xf32, #tpu.memory_space<vmem>>, vector<2x32xf32>
      %c1_165 = arith.constant 1 : index
      %c0_166 = arith.constant 0 : index
      %c0_167 = arith.constant 0 : index
      %571 = vector.load %arg8[%c1_165, %c0_166, %c0_167] : memref<2x2x32xf32, #tpu.memory_space<vmem>>, vector<1x2x32xf32>
      %572 = vector.shape_cast %571 : vector<1x2x32xf32> to vector<2x32xf32>
      %573 = vector.shape_cast %570 : vector<2x32xf32> to vector<1x2x32xf32>
      tpu.vector_store %arg8[%c1_165, %c0_166, %c0_167], %573 {strides = array<i32>} : memref<2x2x32xf32, #tpu.memory_space<vmem>>, vector<1x2x32xf32>,
    } else {
    }
    return
  }
  func.func @transform_0(%arg0: i32) -> (i32, i32, i32) {
    %c0_i32 = arith.constant 0 : i32
    %c0_i32_0 = arith.constant 0 : i32
    %c0_i32_1 = arith.constant 0 : i32
    return %arg0, %c0_i32, %c0_i32_0 : i32, i32, i32
  }
  func.func @transform_1(%arg0: i32) -> (i32, i32, i32) {
    %c0_i32 = arith.constant 0 : i32
    %0 = arith.subi %c0_i32, %arg0 : i32
    %c0_i32_0 = arith.constant 0 : i32
    %c0_i32_1 = arith.constant 0 : i32
    %c0_i32_2 = arith.constant 0 : i32
    return %0, %c0_i32_0, %c0_i32_1 : i32, i32, i32
  }
  func.func @transform_2(%arg0: i32) -> (i32, i32, i32) {
    %c0_i32 = arith.constant 0 : i32
    %c0_i32_0 = arith.constant 0 : i32
    %c0_i32_1 = arith.constant 0 : i32
    %c0_i32_2 = arith.constant 0 : i32
    return %c0_i32, %c0_i32_0, %c0_i32_1 : i32, i32, i32
  }
  func.func @transform_3(%arg0: i32) -> (i32, i32, i32) {
    %c0_i32 = arith.constant 0 : i32
    %c0_i32_0 = arith.constant 0 : i32
    %c0_i32_1 = arith.constant 0 : i32
    %c0_i32_2 = arith.constant 0 : i32
    return %c0_i32, %c0_i32_0, %c0_i32_1 : i32, i32, i32
  }
  func.func @transform_4(%arg0: i32) -> (i32, i32, i32) {
    %c0_i32 = arith.constant 0 : i32
    %c0_i32_0 = arith.constant 0 : i32
    %c0_i32_1 = arith.constant 0 : i32
    %c0_i32_2 = arith.constant 0 : i32
    return %c0_i32, %c0_i32_0, %c0_i32_1 : i32, i32, i32
  }
  func.func @transform_5(%arg0: i32) -> (i32, i32, i32) {
    %c0_i32 = arith.constant 0 : i32
    %c0_i32_0 = arith.constant 0 : i32
    %c0_i32_1 = arith.constant 0 : i32
    return %arg0, %c0_i32, %c0_i32_0 : i32, i32, i32
  }
  func.func @transform_6(%arg0: i32) -> (i32, i32, i32) {
    %c0_i32 = arith.constant 0 : i32
    %0 = arith.subi %c0_i32, %arg0 : i32
    %c0_i32_0 = arith.constant 0 : i32
    %c0_i32_1 = arith.constant 0 : i32
    %c0_i32_2 = arith.constant 0 : i32
    return %0, %c0_i32_0, %c0_i32_1 : i32, i32, i32
  }
  func.func @transform_7(%arg0: i32) -> (i32, i32, i32) {
    %c0_i32 = arith.constant 0 : i32
    %c0_i32_0 = arith.constant 0 : i32
    %c0_i32_1 = arith.constant 0 : i32
    %c0_i32_2 = arith.constant 0 : i32
    return %c0_i32, %c0_i32_0, %c0_i32_1 : i32, i32, i32
  }
}

</mosaic_0001>

<bundles_post_ra>
// kernel: encoder_forward.2
= control target key start
LH: loop header
LB: loop body
LE: loop exit
PB: predicated region body
PF: predicated region fallthrough
CT: control target
= control target key end

     0   :  { %vm60_vm0 = vcmask 254976   ;;  %vm97_vm1 = vcmask 261120   ;;  %s1609_s19 = smov 32   ;;  %s1610_s24 = smov 96   ;;  %s2149_s2 = inlined_call_operand.vmem [shape: bf16[2,32,96], index: 2, kind: input, shape index: {}]   ;;  %s2150_s4 = inlined_call_operand.vmem [shape: f32[2,2,32], index: 4, kind: input, shape index: {}]   ;;  %s2151_s3 = inlined_call_operand.vmem [shape: f32[2,1,32], index: 3, kind: input, shape index: {}]   ;;  %s2152_s0 = inlined_call_operand.vmem [shape: bf16[8,2,96], index: 0, kind: input, shape index: {}]   ;;  %s2153_s1 = inlined_call_operand.vmem [shape: bf16[8,2,96], index: 1, kind: input, shape index: {}]   ;;  %s2154_s5 = inlined_call_operand.vmem [shape: bf16[8,2,32], index: 5, kind: output, shape index: {0}]   ;;  %s2155_s6 = inlined_call_operand.vmem [shape: bf16[8,2,32], index: 6, kind: output, shape index: {1}]   ;;  %s2156_s7 = inlined_call_operand.vmem [shape: f32[2,2,32], index: 7, kind: output, shape index: {2}]  }
   0x1   :  { %v1654_v0 = vld [vmem:[%s2149_s2 + $0x8] sm:$0xff]  ;;  %v1659_v1 = vld [vmem:[%s2149_s2 + $0x18] sm:$0xff]  ;;  %v1664_v2 = vld [vmem:[%s2149_s2] sm:$0xff] }
   0x2   :  { %v1669_v3 = vld [vmem:[%s2149_s2 + $0x10] sm:$0xff]  ;;  %v59_v4 = vld [vmem:[%s2150_s4] sm:$0x3]  ;;  %v1420_v5 = vld [vmem:[%s2150_s4 + $0x2] sm:$0x3]  ;;  %107 = vmatpush.bf16.msra.mxu0 %v1654_v0  ;;  %204 = vmatpush.bf16.msra.mxu1 %v1659_v1  ;;  %s1608_s2 = smov 64  }
   0x3   :  { %61 = vst.msk [vmem:[#allocation2] sm:$0x3] %vm60_vm0, %v59_v4  ;;  %v1510_v6 = vld [vmem:[%s2151_s3] ss:$0 sm:$0xff]  ;;  %291 = vmatpush.bf16.msra.mxu2 %v1654_v0  ;;  %369 = vmatpush.bf16.msra.mxu3 %v1659_v1  ;;  %v1511_v7 = vld [vmem:[%s2151_s3 + $0x1] ss:$0 sm:$0xff] }
   0x4   :  { %64 = vst.msk [vmem:[#allocation3] sm:$0x3] %vm60_vm0, %v1420_v5  ;;  %135 = vrot.lane.b32.xlu0 %v1510_v6, %s1608_s2  ;;  %v83_v20 = vld [vmem:[%s2152_s0] sm:$0x1]  ;;  %v1436_v23 = vld [vmem:[%s2153_s1 + $0x7] sm:$0x1] }
   0x5   :  { %v114_v21 = vunpack.c.l.bf16 %v83_v20  ;;  %v211_v25 = vunpack.c.l.bf16 %v1436_v23 }
   0x6   :  { %108 = vmatpush.bf16.msra.mxu0 %v1664_v2  ;;  %205 = vmatpush.bf16.msra.mxu1 %v1669_v3 }
   0x7   :  { %292 = vmatpush.bf16.msra.mxu2 %v1664_v2  ;;  %370 = vmatpush.bf16.msra.mxu3 %v1669_v3 }
   0xa   :  { %525 = vmatpush.bf16.msrb.mxu1 %v1659_v1  ;;  %447 = vmatpush.bf16.msrb.mxu0 %v1654_v0  ;;  %v1696_v8 = vld [vmem:[#allocation2] sm:$0x3] }
   0xb   :  { %603 = vmatpush.bf16.msrb.mxu2 %v1654_v0  ;;  %681 = vmatpush.bf16.msrb.mxu3 %v1659_v1  ;;  %v84_v9 = vpack.c.bf16 %v1696_v8, %v1696_v8  ;;  %v1702_v10 = vld [vmem:[#allocation3] sm:$0x3] }
   0xc   :  { %v182_v11 = vpack.c.bf16 %v1702_v10, %v1702_v10  ;;  %232 = vrot.lane.b32.xlu0 %v1511_v7, %s1608_s2 }
   0xd   :  { %1434 = vmatmul.msk.bf16.vlgmr.msra.gmra.mxu0 %vm97_vm1, %v84_v9 }
   0xe   :  { %1445 = vmatmul.msk.bf16.vlgmr.msra.gmra.mxu1 %vm97_vm1, %v182_v11  ;;  %448 = vmatpush.bf16.msrb.mxu0 %v1664_v2 }
   0xf   :  { %526 = vmatpush.bf16.msrb.mxu1 %v1669_v3  ;;  %604 = vmatpush.bf16.msrb.mxu2 %v1664_v2 }
  0x10   :  { %682 = vmatpush.bf16.msrb.mxu3 %v1669_v3 }
  0x12   :  { %759 = vmatpush.bf16.msra.mxu0 %v1654_v0 }
  0x13   :  { %837 = vmatpush.bf16.msra.mxu1 %v1659_v1 }
  0x16   :  { %760 = vmatpush.bf16.msra.mxu0 %v1664_v2 }
  0x17   :  { %838 = vmatpush.bf16.msra.mxu1 %v1669_v3 }
  0x76   :  { %v1717_v12 = vpop.permute.xlu0 %135 }
  0x7e   :  { %v1721_v16 = vpop.permute.xlu0 %232 }
  0x8a   :  { %v110_v13 = vpop.f32.mrf.mxu0 }
  0x8b   :  { %v207_v14 = vpop.f32.mrf.mxu1  ;;  %v138_v15 = vadd.f32 %v1717_v12, %v110_v13  ;;  %v115_v22 = vadd.f32 %v114_v21, %v110_v13 }
  0x8c   :  { %v235_v17 = vadd.f32 %v1721_v16, %v207_v14  ;;  %v212_v26 = vadd.f32 %v211_v25, %v207_v14 }
  0x8d   :  { %140 = vrot.lane.b32.xlu1 %v138_v15, %s1608_s2  ;;  %v1435_v24 = vmul.f32 -1.442695, %v115_v22 }
  0x8e   :  { %v1446_v27 = vmul.f32 -1.442695, %v212_v26 }
  0x8f   :  { %1512 = vpow2.f32 %v1435_v24 }
  0x90   :  { %1514 = vpow2.f32 %v1446_v27 }
  0x92   :  { %v112_v18 = vpop.f32.mrf.mxu0 }
  0x93   :  { %v209_v19 = vpop.f32.mrf.mxu1 }
  0x95   :  { %237 = vrot.lane.b32.xlu1 %v235_v17, %s1608_s2  ;;  %v1513_v28 = vpop.eup %1512 }
  0x96   :  { %v119_v29 = vadd.f32 1.0, %v1513_v28  ;;  %v1515_v30 = vpop.eup %1514 }
  0x97   :  { %v216_v31 = vadd.f32 1.0, %v1515_v30 }
  0x98   :  { %1516 = vrcp.f32 %v119_v29  ;;  %v131_v40 = vand.u32 2147483648, %v119_v29  ;;  %vm125_vm3 = vweird.f32 %v119_v29  ;;  %v129_v41 = vand.u32 2147483647, %v119_v29 }
  0x99   :  { %1518 = vrcp.f32 %v216_v31  ;;  %vm222_vm6 = vweird.f32 %v216_v31  ;;  %v228_v49 = vand.u32 2147483648, %v216_v31  ;;  %v226_v50 = vand.u32 2147483647, %v216_v31 }
  0x9a   :  { %v132_v44 = vor.u32 1.1754944e-38, %v131_v40  ;;  %vm130_vm5 = vcmp.eq.f32.partialorder %v129_v41, 8.507059e+37 }
  0x9b   :  { %v229_v52 = vor.u32 1.1754944e-38, %v228_v49  ;;  %vm227_vm9 = vcmp.eq.f32.partialorder %v226_v50, 8.507059e+37 }
  0x9e   :  { %v1517_v32 = vpop.eup %1516 }
  0x9f   :  { %v121_v33 = vmul.f32 %v1517_v32, %v119_v29  ;;  %v1519_v35 = vpop.eup %1518  ;;  %vm126_vm2 = vweird.f32 %v1517_v32 }
  0xa0   :  { %v218_v37 = vmul.f32 %v1519_v35, %v216_v31  ;;  %vm127_vm4 = vmor %vm125_vm3, %vm126_vm2  ;;  %vm223_vm7 = vweird.f32 %v1519_v35 }
  0xa1   :  { %v122_v34 = vsub.f32 1.0, %v121_v33  ;;  %vm224_vm8 = vmor %vm222_vm6, %vm223_vm7 }
  0xa2   :  { %v219_v39 = vsub.f32 1.0, %v218_v37 }
  0xa3   :  { %v123_v36 = vmul.f32 %v1517_v32, %v122_v34 }
  0xa4   :  { %v220_v43 = vmul.f32 %v1519_v35, %v219_v39 }
  0xa5   :  { %v124_v38 = vadd.f32 %v1517_v32, %v123_v36 }
  0xa6   :  { %v221_v48 = vadd.f32 %v1519_v35, %v220_v43 }
  0xa7   :  { %v128_v42 = vsel %vm127_vm4, %v1517_v32, %v124_v38  ;;  %v1448_v32 = vld [vmem:[%s2152_s0 + $0x1] sm:$0x1]  ;;  %v1452_v38 = vld [vmem:[%s2153_s1 + $0x6] sm:$0x1] }
  0xa8   :  { %v133_v46 = vsel %vm130_vm5, %v132_v44, %v128_v42  ;;  %v225_v51 = vsel %vm224_vm8, %v1519_v35, %v221_v48  ;;  %v298_v33 = vunpack.c.l.bf16 %v1448_v32  ;;  %v376_v40 = vunpack.c.l.bf16 %v1452_v38 }
  0xa9   :  { %v230_v54 = vsel %vm227_vm9, %v229_v52, %v225_v51 }
  0xff   :  { %v141_v45 = vpop.permute.xlu1 %140 }
 0x100   :  { %v143_v47 = vmul.f32 %v141_v45, %v133_v46 }
 0x102   :  { %145 = vrot.lane.b32.xlu2 %v143_v47, %s1608_s2 }
 0x107   :  { %v238_v53 = vpop.permute.xlu1 %237 }
 0x108   :  { %v240_v55 = vmul.f32 %v238_v53, %v230_v54 }
 0x10a   :  { %242 = vrot.lane.b32.xlu2 %v240_v55, %s1608_s2 }
 0x15c   :  { %v146_v56 = vpop.permute.xlu2 %145 }
 0x15d   :  { %v148_v57 = vadd.f32 %v146_v56, %v114_v21 }
 0x15f   :  { %1520 = vtanh.f32 %v148_v57 }
 0x164   :  { %v243_v58 = vpop.permute.xlu2 %242 }
 0x165   :  { %v1521_v59 = vpop.eup %1520  ;;  %v245_v60 = vadd.f32 %v243_v58, %v211_v25 }
 0x166   :  { %151 = vst [vmem:[#allocation1] ss:$4 sm:$0xff] %v1521_v59 }
 0x167   :  { %1522 = vtanh.f32 %v245_v60 }
 0x16d   :  { %v1523_v61 = vpop.eup %1522  ;;  %v152_v62 = vld.sshfl [vmem:[#allocation1] sm:$0xff pattern:$0x73625140] }
 0x16e   :  { %153 = vrot.lane.b32.xlu0 %v152_v62, %s1608_s2  ;;  %248 = vst [vmem:[#allocation1] ss:$4 sm:$0xff] %v1523_v61 }
 0x175   :  { %v249_v63 = vld.sshfl [vmem:[#allocation1] sm:$0xff pattern:$0x73625140] }
 0x176   :  { %250 = vrot.lane.b32.xlu1 %v249_v63, %s1608_s2 }
 0x1e0   :  { %v154_v4 = vpop.permute.xlu0 %153 }
 0x1e1   :  { %v156_v5 = vsub.f32 %v1696_v8, %v154_v4 }
 0x1e3   :  { %158 = vrot.lane.b32.xlu2 %v156_v5, %s1609_s19 }
 0x1e8   :  { %v251_v6 = vpop.permute.xlu1 %250 }
 0x1e9   :  { %v253_v7 = vsub.f32 %v1702_v10, %v251_v6 }
 0x1eb   :  { %255 = vrot.lane.b32.xlu0 %v253_v7, %s1609_s19 }
 0x23d   :  { %v159_v9 = vpop.permute.xlu2 %158 }
 0x23e   :  { %v161_v11 = vmul.f32 %v159_v9, %v133_v46 }
 0x240   :  { %163 = vrot.lane.b32.xlu1 %v161_v11, %s1609_s19 }
 0x25d   :  { %v256_v13 = vpop.permute.xlu0 %255 }
 0x25e   :  { %v258_v14 = vmul.f32 %v256_v13, %v230_v54 }
 0x260   :  { %260 = vrot.lane.b32.xlu2 %v258_v14, %s1609_s19 }
 0x2b2   :  { %v164_v15 = vpop.permute.xlu1 %163 }
 0x2b3   :  { %v1741_v17 = vadd.f32 %v1521_v59, %v164_v15 }
 0x2b5   :  { %v1745_v8 = vpack.c.bf16 %v1741_v17, %v1741_v17 }
 0x2b7   :  { %v278_v18 = vunpack.c.l.b16 %v1745_v8 }
 0x2b9   :  { %v279_v10 = vpack.c.b16 %v278_v18, %v278_v18 }
 0x2ba   :  { %v261_v19 = vpop.permute.xlu2 %260 }
 0x2bb   :  { %v1748_v20 = vadd.f32 %v1523_v61, %v261_v19  ;;  %280 = vrot.lane.b32.xlu0 %v279_v10, %s1608_s2 }
 0x2bd   :  { %v1753_v21 = vpack.c.bf16 %v1748_v20, %v1748_v20 }
 0x2bf   :  { %v356_v22 = vunpack.c.l.b16 %v1753_v21 }
 0x2c1   :  { %v357_v23 = vpack.c.b16 %v356_v22, %v356_v22 }
 0x2c3   :  { %358 = vrot.lane.b32.xlu1 %v357_v23, %s1608_s2 }
 0x32d   :  { %v281_v24 = vpop.permute.xlu0 %280 }
 0x32e   :  { %1449 = vmatmul.msk.bf16.vlgmr.msra.gmra.mxu2 %vm97_vm1, %v281_v24 }
 0x32f   :  { %915 = vmatpush.bf16.msra.mxu2 %v1654_v0 }
 0x333   :  { %916 = vmatpush.bf16.msra.mxu2 %v1664_v2 }
 0x335   :  { %v359_v25 = vpop.permute.xlu1 %358 }
 0x336   :  { %1453 = vmatmul.msk.bf16.vlgmr.msra.gmra.mxu3 %vm97_vm1, %v359_v25 }
 0x337   :  { %993 = vmatpush.bf16.msra.mxu3 %v1659_v1 }
 0x33b   :  { %994 = vmatpush.bf16.msra.mxu3 %v1669_v3 }
 0x3b1   :  { %v294_v26 = vpop.f32.mrf.mxu2 }
 0x3b2   :  { %v319_v27 = vadd.f32 %v294_v26, %v1717_v12  ;;  %v299_v34 = vadd.f32 %v298_v33, %v294_v26 }
 0x3b4   :  { %321 = vrot.lane.b32.xlu2 %v319_v27, %s1608_s2  ;;  %v1450_v35 = vmul.f32 -1.442695, %v299_v34 }
 0x3b6   :  { %1524 = vpow2.f32 %v1450_v35 }
 0x3b9   :  { %v296_v28 = vpop.f32.mrf.mxu2  ;;  %v372_v29 = vpop.f32.mrf.mxu3 }
 0x3ba   :  { %v397_v30 = vadd.f32 %v372_v29, %v1721_v16  ;;  %v377_v42 = vadd.f32 %v376_v40, %v372_v29 }
 0x3bc   :  { %399 = vrot.lane.b32.xlu0 %v397_v30, %s1608_s2  ;;  %v1525_v36 = vpop.eup %1524  ;;  %v1454_v44 = vmul.f32 -1.442695, %v377_v42  ;;  %v1456_v42 = vld [vmem:[%s2152_s0 + $0x2] sm:$0x1] }
 0x3bd   :  { %v303_v37 = vadd.f32 1.0, %v1525_v36 }
 0x3bf   :  { %1526 = vrcp.f32 %v303_v37  ;;  %v315_v47 = vand.u32 2147483648, %v303_v37  ;;  %vm309_vm11 = vweird.f32 %v303_v37  ;;  %v313_v48 = vand.u32 2147483647, %v303_v37 }
 0x3c0   :  { %1528 = vpow2.f32 %v1454_v44 }
 0x3c1   :  { %v374_v31 = vpop.f32.mrf.mxu3  ;;  %v316_v51 = vor.u32 1.1754944e-38, %v315_v47  ;;  %vm314_vm13 = vcmp.eq.f32.partialorder %v313_v48, 8.507059e+37 }
 0x3c5   :  { %v1527_v39 = vpop.eup %1526 }
 0x3c6   :  { %v305_v41 = vmul.f32 %v1527_v39, %v303_v37  ;;  %vm310_vm10 = vweird.f32 %v1527_v39  ;;  %v1529_v49 = vpop.eup %1528 }
 0x3c7   :  { %vm311_vm12 = vmor %vm309_vm11, %vm310_vm10  ;;  %v381_v52 = vadd.f32 1.0, %v1529_v49 }
 0x3c8   :  { %v306_v43 = vsub.f32 1.0, %v305_v41 }
 0x3c9   :  { %1530 = vrcp.f32 %v381_v52  ;;  %v393_v61 = vand.u32 2147483648, %v381_v52  ;;  %vm387_vm15 = vweird.f32 %v381_v52  ;;  %v391_v62 = vand.u32 2147483647, %v381_v52 }
 0x3ca   :  { %v307_v45 = vmul.f32 %v1527_v39, %v306_v43  ;;  %v454_v43 = vunpack.c.l.bf16 %v1456_v42 }
 0x3cb   :  { %v394_v4 = vor.u32 1.1754944e-38, %v393_v61  ;;  %vm392_vm3 = vcmp.eq.f32.partialorder %v391_v62, 8.507059e+37 }
 0x3cc   :  { %v308_v46 = vadd.f32 %v1527_v39, %v307_v45  ;;  %v1460_v45 = vld [vmem:[%s2153_s1 + $0x5] sm:$0x1] }
 0x3cd   :  { %v532_v47 = vunpack.c.l.bf16 %v1460_v45 }
 0x3ce   :  { %v312_v50 = vsel %vm311_vm12, %v1527_v39, %v308_v46 }
 0x3cf   :  { %v317_v53 = vsel %vm314_vm13, %v316_v51, %v312_v50  ;;  %v1531_v56 = vpop.eup %1530 }
 0x3d0   :  { %v383_v57 = vmul.f32 %v1531_v56, %v381_v52  ;;  %vm388_vm14 = vweird.f32 %v1531_v56 }
 0x3d1   :  { %vm389_vm2 = vmor %vm387_vm15, %vm388_vm14 }
 0x3d2   :  { %v384_v58 = vsub.f32 1.0, %v383_v57 }
 0x3d4   :  { %v385_v59 = vmul.f32 %v1531_v56, %v384_v58 }
 0x3d6   :  { %v386_v60 = vadd.f32 %v1531_v56, %v385_v59 }
 0x3d8   :  { %v390_v63 = vsel %vm389_vm2, %v1531_v56, %v386_v60 }
 0x3d9   :  { %v395_v6 = vsel %vm392_vm3, %v394_v4, %v390_v63 }
 0x40e   :  { %v322_v54 = vpop.permute.xlu2 %321 }
 0x40f   :  { %v324_v55 = vmul.f32 %v322_v54, %v317_v53 }
 0x411   :  { %326 = vrot.lane.b32.xlu1 %v324_v55, %s1608_s2 }
 0x42e   :  { %v400_v5 = vpop.permute.xlu0 %399 }
 0x42f   :  { %v402_v7 = vmul.f32 %v400_v5, %v395_v6 }
 0x431   :  { %404 = vrot.lane.b32.xlu2 %v402_v7, %s1608_s2 }
 0x483   :  { %v327_v9 = vpop.permute.xlu1 %326 }
 0x484   :  { %v329_v11 = vadd.f32 %v327_v9, %v298_v33 }
 0x486   :  { %1532 = vtanh.f32 %v329_v11 }
 0x48b   :  { %v405_v13 = vpop.permute.xlu2 %404 }
 0x48c   :  { %v1533_v14 = vpop.eup %1532  ;;  %v407_v15 = vadd.f32 %v405_v13, %v376_v40 }
 0x48d   :  { %v331_v18 = vsub.f32 %v1741_v17, %v1533_v14 }
 0x48e   :  { %1534 = vtanh.f32 %v407_v15 }
 0x48f   :  { %333 = vrot.lane.b32.xlu0 %v331_v18, %s1610_s24 }
 0x494   :  { %v1535_v10 = vpop.eup %1534 }
 0x495   :  { %v409_v19 = vsub.f32 %v1748_v20, %v1535_v10 }
 0x497   :  { %411 = vrot.lane.b32.xlu1 %v409_v19, %s1610_s24 }
 0x501   :  { %v334_v22 = vpop.permute.xlu0 %333 }
 0x502   :  { %v336_v23 = vmul.f32 %v334_v22, %v317_v53 }
 0x504   :  { %338 = vrot.lane.b32.xlu2 %v336_v23, %s1609_s19 }
 0x509   :  { %v412_v24 = vpop.permute.xlu1 %411 }
 0x50a   :  { %v414_v25 = vmul.f32 %v412_v24, %v395_v6 }
 0x50c   :  { %416 = vrot.lane.b32.xlu0 %v414_v25, %s1609_s19 }
 0x55e   :  { %v339_v26 = vpop.permute.xlu2 %338 }
 0x55f   :  { %v1781_v27 = vadd.f32 %v1533_v14, %v339_v26 }
 0x561   :  { %v1785_v17 = vpack.c.bf16 %v1781_v27, %v1781_v27 }
 0x563   :  { %v434_v28 = vunpack.c.l.b16 %v1785_v17 }
 0x565   :  { %v435_v20 = vpack.c.b16 %v434_v28, %v434_v28 }
 0x567   :  { %436 = vrot.lane.b32.xlu1 %v435_v20, %s1608_s2 }
 0x57e   :  { %v417_v29 = vpop.permute.xlu0 %416 }
 0x57f   :  { %v1789_v30 = vadd.f32 %v1535_v10, %v417_v29 }
 0x581   :  { %v1793_v31 = vpack.c.bf16 %v1789_v30, %v1789_v30 }
 0x583   :  { %v512_v32 = vunpack.c.l.b16 %v1793_v31 }
 0x585   :  { %v513_v33 = vpack.c.b16 %v512_v32, %v512_v32 }
 0x587   :  { %514 = vrot.lane.b32.xlu2 %v513_v33, %s1608_s2 }
 0x5d9   :  { %v437_v34 = vpop.permute.xlu1 %436 }
 0x5da   :  { %1457 = vmatmul.msk.bf16.vlgmr.msrb.gmra.mxu0 %vm97_vm1, %v437_v34 }
 0x5db   :  { %1071 = vmatpush.bf16.msrb.mxu0 %v1654_v0 }
 0x5df   :  { %1072 = vmatpush.bf16.msrb.mxu0 %v1664_v2 }
 0x5e1   :  { %v515_v35 = vpop.permute.xlu2 %514 }
 0x5e2   :  { %1461 = vmatmul.msk.bf16.vlgmr.msrb.gmra.mxu1 %vm97_vm1, %v515_v35 }
 0x5e3   :  { %1149 = vmatpush.bf16.msrb.mxu1 %v1659_v1 }
 0x5e7   :  { %1150 = vmatpush.bf16.msrb.mxu1 %v1669_v3 }
 0x657   :  { %v450_v36 = vpop.f32.mrf.mxu0 }
 0x658   :  { %v475_v37 = vadd.f32 %v450_v36, %v1717_v12  ;;  %v455_v44 = vadd.f32 %v454_v43, %v450_v36 }
 0x65a   :  { %477 = vrot.lane.b32.xlu0 %v475_v37, %s1608_s2  ;;  %v1458_v46 = vmul.f32 -1.442695, %v455_v44 }
 0x65c   :  { %1536 = vpow2.f32 %v1458_v46 }
 0x65f   :  { %v452_v38 = vpop.f32.mrf.mxu0  ;;  %v528_v39 = vpop.f32.mrf.mxu1 }
 0x660   :  { %v553_v40 = vadd.f32 %v528_v39, %v1721_v16  ;;  %v533_v48 = vadd.f32 %v532_v47, %v528_v39 }
 0x662   :  { %555 = vrot.lane.b32.xlu1 %v553_v40, %s1608_s2  ;;  %v1462_v49 = vmul.f32 -1.442695, %v533_v48  ;;  %v1537_v50 = vpop.eup %1536 }
 0x663   :  { %v459_v51 = vadd.f32 1.0, %v1537_v50 }
 0x664   :  { %1538 = vpow2.f32 %v1462_v49 }
 0x665   :  { %1540 = vrcp.f32 %v459_v51  ;;  %v471_v62 = vand.u32 2147483648, %v459_v51  ;;  %vm465_vm5 = vweird.f32 %v459_v51  ;;  %v469_v63 = vand.u32 2147483647, %v459_v51 }
 0x667   :  { %v530_v41 = vpop.f32.mrf.mxu1  ;;  %v472_v6 = vor.u32 1.1754944e-38, %v471_v62  ;;  %vm470_vm7 = vcmp.eq.f32.partialorder %v469_v63, 8.507059e+37 }
 0x66a   :  { %v1539_v52 = vpop.eup %1538 }
 0x66b   :  { %v537_v53 = vadd.f32 1.0, %v1539_v52  ;;  %v1541_v54 = vpop.eup %1540 }
 0x66c   :  { %v461_v55 = vmul.f32 %v1541_v54, %v459_v51  ;;  %vm466_vm4 = vweird.f32 %v1541_v54 }
 0x66d   :  { %1542 = vrcp.f32 %v537_v53  ;;  %vm467_vm6 = vmor %vm465_vm5, %vm466_vm4  ;;  %v549_v14 = vand.u32 2147483648, %v537_v53  ;;  %vm543_vm9 = vweird.f32 %v537_v53  ;;  %v547_v15 = vand.u32 2147483647, %v537_v53 }
 0x66e   :  { %v462_v56 = vsub.f32 1.0, %v461_v55 }
 0x66f   :  { %v550_v10 = vor.u32 1.1754944e-38, %v549_v14  ;;  %vm548_vm11 = vcmp.eq.f32.partialorder %v547_v15, 8.507059e+37 }
 0x670   :  { %v463_v58 = vmul.f32 %v1541_v54, %v462_v56 }
 0x672   :  { %v464_v60 = vadd.f32 %v1541_v54, %v463_v58 }
 0x673   :  { %v1543_v57 = vpop.eup %1542 }
 0x674   :  { %v539_v59 = vmul.f32 %v1543_v57, %v537_v53  ;;  %v468_v4 = vsel %vm467_vm6, %v1541_v54, %v464_v60  ;;  %vm544_vm8 = vweird.f32 %v1543_v57 }
 0x675   :  { %v473_v9 = vsel %vm470_vm7, %v472_v6, %v468_v4  ;;  %vm545_vm10 = vmor %vm543_vm9, %vm544_vm8 }
 0x676   :  { %v540_v61 = vsub.f32 1.0, %v539_v59 }
 0x678   :  { %v541_v5 = vmul.f32 %v1543_v57, %v540_v61 }
 0x67a   :  { %v542_v13 = vadd.f32 %v1543_v57, %v541_v5 }
 0x67c   :  { %v546_v18 = vsel %vm545_vm10, %v1543_v57, %v542_v13 }
 0x67d   :  { %v551_v22 = vsel %vm548_vm11, %v550_v10, %v546_v18 }
 0x6cc   :  { %v478_v7 = vpop.permute.xlu0 %477 }
 0x6cd   :  { %v480_v11 = vmul.f32 %v478_v7, %v473_v9 }
 0x6cf   :  { %482 = vrot.lane.b32.xlu2 %v480_v11, %s1608_s2 }
 0x6d4   :  { %v556_v19 = vpop.permute.xlu1 %555 }
 0x6d5   :  { %v558_v23 = vmul.f32 %v556_v19, %v551_v22 }
 0x6d7   :  { %560 = vrot.lane.b32.xlu0 %v558_v23, %s1608_s2 }
 0x729   :  { %v483_v24 = vpop.permute.xlu2 %482 }
 0x72a   :  { %v485_v25 = vadd.f32 %v483_v24, %v454_v43 }
 0x72c   :  { %1544 = vtanh.f32 %v485_v25 }
 0x732   :  { %v1545_v26 = vpop.eup %1544 }
 0x733   :  { %v487_v28 = vsub.f32 %v1781_v27, %v1545_v26 }
 0x735   :  { %489 = vrot.lane.b32.xlu1 %v487_v28, %s1610_s24 }
 0x749   :  { %v561_v20 = vpop.permute.xlu0 %560 }
 0x74a   :  { %v563_v29 = vadd.f32 %v561_v20, %v532_v47 }
 0x74c   :  { %1546 = vtanh.f32 %v563_v29 }
 0x752   :  { %v1547_v32 = vpop.eup %1546 }
 0x753   :  { %v565_v33 = vsub.f32 %v1789_v30, %v1547_v32 }
 0x755   :  { %567 = vrot.lane.b32.xlu2 %v565_v33, %s1610_s24 }
 0x7a7   :  { %v490_v34 = vpop.permute.xlu1 %489 }
 0x7a8   :  { %v492_v35 = vmul.f32 %v490_v34, %v473_v9 }
 0x7aa   :  { %494 = vrot.lane.b32.xlu0 %v492_v35, %s1609_s19 }
 0x7af   :  { %v568_v36 = vpop.permute.xlu2 %567 }
 0x7b0   :  { %v570_v37 = vmul.f32 %v568_v36, %v551_v22 }
 0x7b2   :  { %572 = vrot.lane.b32.xlu1 %v570_v37, %s1609_s19 }
 0x81c   :  { %v495_v38 = vpop.permute.xlu0 %494 }
 0x81d   :  { %v1821_v27 = vadd.f32 %v1545_v26, %v495_v38 }
 0x81f   :  { %v1825_v39 = vpack.c.bf16 %v1821_v27, %v1821_v27 }
 0x821   :  { %v590_v40 = vunpack.c.l.b16 %v1825_v39 }
 0x823   :  { %v591_v30 = vpack.c.b16 %v590_v40, %v590_v40 }
 0x824   :  { %v573_v41 = vpop.permute.xlu1 %572 }
 0x825   :  { %v1828_v42 = vadd.f32 %v1547_v32, %v573_v41  ;;  %592 = vrot.lane.b32.xlu2 %v591_v30, %s1608_s2 }
 0x827   :  { %v1833_v43 = vpack.c.bf16 %v1828_v42, %v1828_v42 }
 0x829   :  { %v668_v44 = vunpack.c.l.b16 %v1833_v43 }
 0x82b   :  { %v669_v45 = vpack.c.b16 %v668_v44, %v668_v44 }
 0x82d   :  { %670 = vrot.lane.b32.xlu0 %v669_v45, %s1608_s2 }
 0x87f   :  { %v593_v46 = vpop.permute.xlu2 %592 }
 0x880   :  { %1465 = vmatmul.msk.bf16.vlgmr.msrb.gmra.mxu2 %vm97_vm1, %v593_v46 }
 0x881   :  { %1227 = vmatpush.bf16.msrb.mxu2 %v1654_v0 }
 0x885   :  { %1228 = vmatpush.bf16.msrb.mxu2 %v1664_v2  ;;  %v1464_v2 = vld [vmem:[%s2152_s0 + $0x3] sm:$0x1] }
 0x886   :  { %v610_v53 = vunpack.c.l.bf16 %v1464_v2 }
 0x89f   :  { %v671_v47 = vpop.permute.xlu0 %670 }
 0x8a0   :  { %1469 = vmatmul.msk.bf16.vlgmr.msrb.gmra.mxu3 %vm97_vm1, %v671_v47 }
 0x8a1   :  { %1304 = vmatpush.bf16.msrb.mxu3 %v1659_v1 }
 0x8a5   :  { %1305 = vmatpush.bf16.msrb.mxu3 %v1669_v3  ;;  %v1468_v3 = vld [vmem:[%s2153_s1 + $0x4] sm:$0x1] }
 0x8a6   :  { %v688_v55 = vunpack.c.l.bf16 %v1468_v3 }
 0x903   :  { %v606_v48 = vpop.f32.mrf.mxu2 }
 0x904   :  { %v631_v49 = vadd.f32 %v606_v48, %v1717_v12  ;;  %v611_v1 = vadd.f32 %v610_v53, %v606_v48 }
 0x906   :  { %633 = vrot.lane.b32.xlu1 %v631_v49, %s1608_s2  ;;  %v1466_v54 = vmul.f32 -1.442695, %v611_v1 }
 0x908   :  { %1548 = vpow2.f32 %v1466_v54 }
 0x90b   :  { %v608_v50 = vpop.f32.mrf.mxu2 }
 0x90e   :  { %v1549_v58 = vpop.eup %1548 }
 0x90f   :  { %v615_v59 = vadd.f32 1.0, %v1549_v58 }
 0x911   :  { %v627_v13 = vand.u32 2147483648, %v615_v59  ;;  %vm621_vm13 = vweird.f32 %v615_v59  ;;  %v625_v14 = vand.u32 2147483647, %v615_v59 }
 0x913   :  { %v628_v10 = vor.u32 1.1754944e-38, %v627_v13  ;;  %vm626_vm15 = vcmp.eq.f32.partialorder %v625_v14, 8.507059e+37 }
 0x923   :  { %v684_v51 = vpop.f32.mrf.mxu3 }
 0x924   :  { %v709_v52 = vadd.f32 %v684_v51, %v1721_v16  ;;  %v689_v56 = vadd.f32 %v688_v55, %v684_v51 }
 0x926   :  { %711 = vrot.lane.b32.xlu2 %v709_v52, %s1608_s2  ;;  %v1470_v57 = vmul.f32 -1.442695, %v689_v56 }
 0x928   :  { %1550 = vpow2.f32 %v1470_v57 }
 0x929   :  { %1552 = vrcp.f32 %v615_v59 }
 0x92b   :  { %v686_v0 = vpop.f32.mrf.mxu3 }
 0x92e   :  { %v1551_v60 = vpop.eup %1550 }
 0x92f   :  { %v693_v61 = vadd.f32 1.0, %v1551_v60  ;;  %v1553_v62 = vpop.eup %1552  ;;  %v1472_v60 = vld [vmem:[%s2152_s0 + $0x4] sm:$0x1] }
 0x930   :  { %v617_v63 = vmul.f32 %v1553_v62, %v615_v59  ;;  %vm622_vm12 = vweird.f32 %v1553_v62 }
 0x931   :  { %1554 = vrcp.f32 %v693_v61  ;;  %vm623_vm14 = vmor %vm621_vm13, %vm622_vm12  ;;  %v705_v25 = vand.u32 2147483648, %v693_v61  ;;  %vm699_vm3 = vweird.f32 %v693_v61  ;;  %v703_v26 = vand.u32 2147483647, %v693_v61 }
 0x932   :  { %v618_v4 = vsub.f32 1.0, %v617_v63 }
 0x933   :  { %v706_v20 = vor.u32 1.1754944e-38, %v705_v25  ;;  %vm704_vm5 = vcmp.eq.f32.partialorder %v703_v26, 8.507059e+37 }
 0x934   :  { %v619_v6 = vmul.f32 %v1553_v62, %v618_v4 }
 0x936   :  { %v620_v9 = vadd.f32 %v1553_v62, %v619_v6  ;;  %v1476_v6 = vld [vmem:[%s2153_s1 + $0x3] sm:$0x1] }
 0x937   :  { %v1555_v5 = vpop.eup %1554 }
 0x938   :  { %v695_v7 = vmul.f32 %v1555_v5, %v693_v61  ;;  %v624_v15 = vsel %vm623_vm14, %v1553_v62, %v620_v9  ;;  %vm700_vm2 = vweird.f32 %v1555_v5  ;;  %v766_v61 = vunpack.c.l.bf16 %v1472_v60 }
 0x939   :  { %v629_v22 = vsel %vm626_vm15, %v628_v10, %v624_v15  ;;  %vm701_vm4 = vmor %vm699_vm3, %vm700_vm2  ;;  %v844_v9 = vunpack.c.l.bf16 %v1476_v6 }
 0x93a   :  { %v696_v11 = vsub.f32 1.0, %v695_v7 }
 0x93c   :  { %v697_v18 = vmul.f32 %v1555_v5, %v696_v11 }
 0x93e   :  { %v698_v24 = vadd.f32 %v1555_v5, %v697_v18 }
 0x940   :  { %v702_v28 = vsel %vm701_vm4, %v1555_v5, %v698_v24 }
 0x941   :  { %v707_v29 = vsel %vm704_vm5, %v706_v20, %v702_v28 }
 0x978   :  { %v634_v19 = vpop.permute.xlu1 %633 }
 0x979   :  { %v636_v23 = vmul.f32 %v634_v19, %v629_v22 }
 0x97b   :  { %638 = vrot.lane.b32.xlu0 %v636_v23, %s1608_s2 }
 0x980   :  { %v712_v32 = vpop.permute.xlu2 %711 }
 0x981   :  { %v714_v33 = vmul.f32 %v712_v32, %v707_v29 }
 0x983   :  { %716 = vrot.lane.b32.xlu1 %v714_v33, %s1608_s2 }
 0x9ed   :  { %v639_v34 = vpop.permute.xlu0 %638 }
 0x9ee   :  { %v641_v35 = vadd.f32 %v639_v34, %v610_v53 }
 0x9f0   :  { %1556 = vtanh.f32 %v641_v35 }
 0x9f5   :  { %v717_v36 = vpop.permute.xlu1 %716 }
 0x9f6   :  { %v1557_v37 = vpop.eup %1556  ;;  %v719_v38 = vadd.f32 %v717_v36, %v688_v55 }
 0x9f7   :  { %v643_v40 = vsub.f32 %v1821_v27, %v1557_v37 }
 0x9f8   :  { %1558 = vtanh.f32 %v719_v38 }
 0x9f9   :  { %645 = vrot.lane.b32.xlu2 %v643_v40, %s1610_s24 }
 0x9fe   :  { %v1559_v30 = vpop.eup %1558 }
 0x9ff   :  { %v721_v41 = vsub.f32 %v1828_v42, %v1559_v30 }
 0xa01   :  { %723 = vrot.lane.b32.xlu0 %v721_v41, %s1610_s24 }
 0xa53   :  { %v646_v44 = vpop.permute.xlu2 %645 }
 0xa54   :  { %v648_v45 = vmul.f32 %v646_v44, %v629_v22 }
 0xa56   :  { %650 = vrot.lane.b32.xlu1 %v648_v45, %s1609_s19 }
 0xa73   :  { %v724_v46 = vpop.permute.xlu0 %723 }
 0xa74   :  { %v726_v47 = vmul.f32 %v724_v46, %v707_v29 }
 0xa76   :  { %728 = vrot.lane.b32.xlu2 %v726_v47, %s1609_s19 }
 0xac8   :  { %v651_v48 = vpop.permute.xlu1 %650 }
 0xac9   :  { %v1861_v49 = vadd.f32 %v1557_v37, %v651_v48 }
 0xacb   :  { %v1865_v27 = vpack.c.bf16 %v1861_v49, %v1861_v49 }
 0xacd   :  { %v746_v50 = vunpack.c.l.b16 %v1865_v27 }
 0xacf   :  { %v747_v42 = vpack.c.b16 %v746_v50, %v746_v50 }
 0xad0   :  { %v729_v51 = vpop.permute.xlu2 %728 }
 0xad1   :  { %v1868_v52 = vadd.f32 %v1559_v30, %v729_v51  ;;  %748 = vrot.lane.b32.xlu0 %v747_v42, %s1608_s2 }
 0xad3   :  { %v1873_v0 = vpack.c.bf16 %v1868_v52, %v1868_v52 }
 0xad5   :  { %v824_v2 = vunpack.c.l.b16 %v1873_v0 }
 0xad7   :  { %v825_v53 = vpack.c.b16 %v824_v2, %v824_v2 }
 0xad9   :  { %826 = vrot.lane.b32.xlu1 %v825_v53, %s1608_s2 }
 0xb43   :  { %v749_v1 = vpop.permute.xlu0 %748 }
 0xb44   :  { %1473 = vmatmul.msk.bf16.vlgmr.msra.gmra.mxu0 %vm97_vm1, %v749_v1 }
 0xb4b   :  { %v827_v3 = vpop.permute.xlu1 %826 }
 0xb4c   :  { %1477 = vmatmul.msk.bf16.vlgmr.msra.gmra.mxu1 %vm97_vm1, %v827_v3 }
 0xbc1   :  { %v762_v54 = vpop.f32.mrf.mxu0 }
 0xbc2   :  { %v787_v55 = vadd.f32 %v762_v54, %v1717_v12  ;;  %v767_v62 = vadd.f32 %v766_v61, %v762_v54 }
 0xbc4   :  { %789 = vrot.lane.b32.xlu2 %v787_v55, %s1608_s2  ;;  %v1474_v63 = vmul.f32 -1.442695, %v767_v62 }
 0xbc6   :  { %1560 = vpow2.f32 %v1474_v63 }
 0xbc9   :  { %v764_v56 = vpop.f32.mrf.mxu0  ;;  %v840_v57 = vpop.f32.mrf.mxu1 }
 0xbca   :  { %v865_v58 = vadd.f32 %v840_v57, %v1721_v16  ;;  %v845_v13 = vadd.f32 %v844_v9, %v840_v57 }
 0xbcc   :  { %867 = vrot.lane.b32.xlu0 %v865_v58, %s1608_s2  ;;  %v1561_v4 = vpop.eup %1560  ;;  %v1478_v15 = vmul.f32 -1.442695, %v845_v13 }
 0xbcd   :  { %v771_v5 = vadd.f32 1.0, %v1561_v4 }
 0xbcf   :  { %1562 = vrcp.f32 %v771_v5  ;;  %v783_v19 = vand.u32 2147483648, %v771_v5  ;;  %vm777_vm7 = vweird.f32 %v771_v5  ;;  %v781_v22 = vand.u32 2147483647, %v771_v5 }
 0xbd0   :  { %1564 = vpow2.f32 %v1478_v15  ;;  %v1480_v15 = vld [vmem:[%s2152_s0 + $0x5] sm:$0x1] }
 0xbd1   :  { %v842_v59 = vpop.f32.mrf.mxu1  ;;  %v784_v25 = vor.u32 1.1754944e-38, %v783_v19  ;;  %vm782_vm9 = vcmp.eq.f32.partialorder %v781_v22, 8.507059e+37  ;;  %v1484_v19 = vld [vmem:[%s2153_s1 + $0x2] sm:$0x1] }
 0xbd5   :  { %v1563_v7 = vpop.eup %1562 }
 0xbd6   :  { %v773_v11 = vmul.f32 %v1563_v7, %v771_v5  ;;  %vm778_vm6 = vweird.f32 %v1563_v7  ;;  %v1565_v23 = vpop.eup %1564 }
 0xbd7   :  { %vm779_vm8 = vmor %vm777_vm7, %vm778_vm6  ;;  %v849_v26 = vadd.f32 1.0, %v1565_v23  ;;  %v1000_v23 = vunpack.c.l.bf16 %v1484_v19 }
 0xbd8   :  { %v774_v14 = vsub.f32 1.0, %v773_v11 }
 0xbd9   :  { %1566 = vrcp.f32 %v849_v26  ;;  %v861_v37 = vand.u32 2147483648, %v849_v26  ;;  %vm855_vm11 = vweird.f32 %v849_v26  ;;  %v859_v38 = vand.u32 2147483647, %v849_v26 }
 0xbda   :  { %v775_v18 = vmul.f32 %v1563_v7, %v774_v14 }
 0xbdb   :  { %v862_v30 = vor.u32 1.1754944e-38, %v861_v37  ;;  %vm860_vm13 = vcmp.eq.f32.partialorder %v859_v38, 8.507059e+37 }
 0xbdc   :  { %v776_v10 = vadd.f32 %v1563_v7, %v775_v18  ;;  %v922_v18 = vunpack.c.l.bf16 %v1480_v15 }
 0xbde   :  { %v780_v24 = vsel %vm779_vm8, %v1563_v7, %v776_v10 }
 0xbdf   :  { %v785_v28 = vsel %vm782_vm9, %v784_v25, %v780_v24  ;;  %v1567_v32 = vpop.eup %1566 }
 0xbe0   :  { %v851_v33 = vmul.f32 %v1567_v32, %v849_v26  ;;  %vm856_vm10 = vweird.f32 %v1567_v32 }
 0xbe1   :  { %vm857_vm12 = vmor %vm855_vm11, %vm856_vm10 }
 0xbe2   :  { %v852_v34 = vsub.f32 1.0, %v851_v33 }
 0xbe4   :  { %v853_v35 = vmul.f32 %v1567_v32, %v852_v34 }
 0xbe6   :  { %v854_v36 = vadd.f32 %v1567_v32, %v853_v35 }
 0xbe8   :  { %v858_v40 = vsel %vm857_vm12, %v1567_v32, %v854_v36 }
 0xbe9   :  { %v863_v44 = vsel %vm860_vm13, %v862_v30, %v858_v40 }
 0xc1e   :  { %v790_v20 = vpop.permute.xlu2 %789 }
 0xc1f   :  { %v792_v29 = vmul.f32 %v790_v20, %v785_v28 }
 0xc21   :  { %794 = vrot.lane.b32.xlu1 %v792_v29, %s1608_s2 }
 0xc3e   :  { %v868_v41 = vpop.permute.xlu0 %867 }
 0xc3f   :  { %v870_v45 = vmul.f32 %v868_v41, %v863_v44 }
 0xc41   :  { %872 = vrot.lane.b32.xlu2 %v870_v45, %s1608_s2 }
 0xc93   :  { %v795_v46 = vpop.permute.xlu1 %794 }
 0xc94   :  { %v797_v47 = vadd.f32 %v795_v46, %v766_v61 }
 0xc96   :  { %1568 = vtanh.f32 %v797_v47 }
 0xc9b   :  { %v873_v48 = vpop.permute.xlu2 %872 }
 0xc9c   :  { %v1569_v50 = vpop.eup %1568  ;;  %v875_v42 = vadd.f32 %v873_v48, %v844_v9 }
 0xc9d   :  { %v799_v51 = vsub.f32 %v1861_v49, %v1569_v50 }
 0xc9e   :  { %1570 = vtanh.f32 %v875_v42 }
 0xc9f   :  { %801 = vrot.lane.b32.xlu0 %v799_v51, %s1610_s24 }
 0xca4   :  { %v1571_v2 = vpop.eup %1570 }
 0xca5   :  { %v877_v53 = vsub.f32 %v1868_v52, %v1571_v2 }
 0xca7   :  { %879 = vrot.lane.b32.xlu1 %v877_v53, %s1610_s24 }
 0xd11   :  { %v802_v1 = vpop.permute.xlu0 %801 }
 0xd12   :  { %v804_v3 = vmul.f32 %v802_v1, %v785_v28 }
 0xd14   :  { %806 = vrot.lane.b32.xlu2 %v804_v3, %s1609_s19 }
 0xd19   :  { %v880_v54 = vpop.permute.xlu1 %879 }
 0xd1a   :  { %v882_v55 = vmul.f32 %v880_v54, %v863_v44 }
 0xd1c   :  { %884 = vrot.lane.b32.xlu0 %v882_v55, %s1609_s19 }
 0xd6e   :  { %v807_v56 = vpop.permute.xlu2 %806 }
 0xd6f   :  { %v1897_v57 = vadd.f32 %v1569_v50, %v807_v56 }
 0xd71   :  { %v1901_v49 = vpack.c.bf16 %v1897_v57, %v1897_v57 }
 0xd73   :  { %v902_v58 = vunpack.c.l.b16 %v1901_v49 }
 0xd75   :  { %v903_v52 = vpack.c.b16 %v902_v58, %v902_v58 }
 0xd77   :  { %904 = vrot.lane.b32.xlu1 %v903_v52, %s1608_s2 }
 0xd8e   :  { %v885_v59 = vpop.permute.xlu0 %884 }
 0xd8f   :  { %v1905_v60 = vadd.f32 %v1571_v2, %v885_v59 }
 0xd91   :  { %v1909_v61 = vpack.c.bf16 %v1905_v60, %v1905_v60 }
 0xd93   :  { %v980_v62 = vunpack.c.l.b16 %v1909_v61 }
 0xd95   :  { %v981_v63 = vpack.c.b16 %v980_v62, %v980_v62 }
 0xd97   :  { %982 = vrot.lane.b32.xlu2 %v981_v63, %s1608_s2 }
 0xde9   :  { %v905_v4 = vpop.permute.xlu1 %904 }
 0xdea   :  { %1481 = vmatmul.msk.bf16.vlgmr.msra.gmra.mxu2 %vm97_vm1, %v905_v4 }
 0xdf1   :  { %v983_v5 = vpop.permute.xlu2 %982 }
 0xdf2   :  { %1485 = vmatmul.msk.bf16.vlgmr.msra.gmra.mxu3 %vm97_vm1, %v983_v5 }
 0xe6d   :  { %v918_v6 = vpop.f32.mrf.mxu2 }
 0xe6e   :  { %v943_v7 = vadd.f32 %v918_v6, %v1717_v12  ;;  %v923_v10 = vadd.f32 %v922_v18, %v918_v6 }
 0xe70   :  { %945 = vrot.lane.b32.xlu0 %v943_v7, %s1608_s2  ;;  %v1482_v22 = vmul.f32 -1.442695, %v923_v10 }
 0xe72   :  { %1572 = vpow2.f32 %v1482_v22 }
 0xe75   :  { %v920_v9 = vpop.f32.mrf.mxu2  ;;  %v996_v11 = vpop.f32.mrf.mxu3 }
 0xe76   :  { %v1021_v13 = vadd.f32 %v996_v11, %v1721_v16  ;;  %v1001_v24 = vadd.f32 %v1000_v23, %v996_v11 }
 0xe78   :  { %1023 = vrot.lane.b32.xlu1 %v1021_v13, %s1608_s2  ;;  %v1486_v25 = vmul.f32 -1.442695, %v1001_v24  ;;  %v1573_v26 = vpop.eup %1572 }
 0xe79   :  { %v927_v28 = vadd.f32 1.0, %v1573_v26 }
 0xe7a   :  { %1574 = vpow2.f32 %v1486_v25 }
 0xe7b   :  { %1576 = vrcp.f32 %v927_v28  ;;  %v939_v30 = vand.u32 2147483648, %v927_v28  ;;  %vm933_vm15 = vweird.f32 %v927_v28  ;;  %v937_v41 = vand.u32 2147483647, %v927_v28 }
 0xe7d   :  { %v998_v14 = vpop.f32.mrf.mxu3  ;;  %v940_v46 = vor.u32 1.1754944e-38, %v939_v30  ;;  %vm938_vm3 = vcmp.eq.f32.partialorder %v937_v41, 8.507059e+37 }
 0xe80   :  { %v1575_v20 = vpop.eup %1574 }
 0xe81   :  { %v1005_v29 = vadd.f32 1.0, %v1575_v20  ;;  %v1577_v32 = vpop.eup %1576 }
 0xe82   :  { %v929_v33 = vmul.f32 %v1577_v32, %v927_v28  ;;  %vm934_vm14 = vweird.f32 %v1577_v32 }
 0xe83   :  { %1578 = vrcp.f32 %v1005_v29  ;;  %vm935_vm2 = vmor %vm933_vm15, %vm934_vm14  ;;  %v1017_v51 = vand.u32 2147483648, %v1005_v29  ;;  %vm1011_vm5 = vweird.f32 %v1005_v29  ;;  %v1015_v2 = vand.u32 2147483647, %v1005_v29 }
 0xe84   :  { %v930_v34 = vsub.f32 1.0, %v929_v33 }
 0xe85   :  { %v1018_v1 = vor.u32 1.1754944e-38, %v1017_v51  ;;  %vm1016_vm7 = vcmp.eq.f32.partialorder %v1015_v2, 8.507059e+37 }
 0xe86   :  { %v931_v36 = vmul.f32 %v1577_v32, %v930_v34  ;;  %v1488_v34 = vld [vmem:[%s2152_s0 + $0x6] sm:$0x1] }
 0xe88   :  { %v932_v38 = vadd.f32 %v1577_v32, %v931_v36 }
 0xe89   :  { %v1579_v35 = vpop.eup %1578 }
 0xe8a   :  { %v1007_v37 = vmul.f32 %v1579_v35, %v1005_v29  ;;  %v936_v44 = vsel %vm935_vm2, %v1577_v32, %v932_v38  ;;  %vm1012_vm4 = vweird.f32 %v1579_v35 }
 0xe8b   :  { %v941_v48 = vsel %vm938_vm3, %v940_v46, %v936_v44  ;;  %vm1013_vm6 = vmor %vm1011_vm5, %vm1012_vm4 }
 0xe8c   :  { %v1008_v40 = vsub.f32 1.0, %v1007_v37  ;;  %v1492_v37 = vld [vmem:[%s2153_s1 + $0x1] sm:$0x1] }
 0xe8e   :  { %v1009_v45 = vmul.f32 %v1579_v35, %v1008_v40  ;;  %v1156_v40 = vunpack.c.l.bf16 %v1492_v37 }
 0xe90   :  { %v1010_v42 = vadd.f32 %v1579_v35, %v1009_v45 }
 0xe92   :  { %v1014_v53 = vsel %vm1013_vm6, %v1579_v35, %v1010_v42  ;;  %v1078_v35 = vunpack.c.l.bf16 %v1488_v34 }
 0xe93   :  { %v1019_v54 = vsel %vm1016_vm7, %v1018_v1, %v1014_v53 }
 0xee2   :  { %v946_v47 = vpop.permute.xlu0 %945 }
 0xee3   :  { %v948_v50 = vmul.f32 %v946_v47, %v941_v48 }
 0xee5   :  { %950 = vrot.lane.b32.xlu2 %v948_v50, %s1608_s2 }
 0xeea   :  { %v1024_v3 = vpop.permute.xlu1 %1023 }
 0xeeb   :  { %v1026_v55 = vmul.f32 %v1024_v3, %v1019_v54 }
 0xeed   :  { %1028 = vrot.lane.b32.xlu0 %v1026_v55, %s1608_s2 }
 0xf3f   :  { %v951_v56 = vpop.permute.xlu2 %950 }
 0xf40   :  { %v953_v58 = vadd.f32 %v951_v56, %v922_v18 }
 0xf42   :  { %1580 = vtanh.f32 %v953_v58 }
 0xf48   :  { %v1581_v52 = vpop.eup %1580 }
 0xf49   :  { %v955_v59 = vsub.f32 %v1897_v57, %v1581_v52 }
 0xf4b   :  { %957 = vrot.lane.b32.xlu1 %v955_v59, %s1610_s24 }
 0xf5f   :  { %v1029_v62 = vpop.permute.xlu0 %1028 }
 0xf60   :  { %v1031_v63 = vadd.f32 %v1029_v62, %v1000_v23 }
 0xf62   :  { %1582 = vtanh.f32 %v1031_v63 }
 0xf68   :  { %v1583_v4 = vpop.eup %1582 }
 0xf69   :  { %v1033_v5 = vsub.f32 %v1905_v60, %v1583_v4 }
 0xf6b   :  { %1035 = vrot.lane.b32.xlu2 %v1033_v5, %s1610_s24 }
 0xfbd   :  { %v958_v6 = vpop.permute.xlu1 %957 }
 0xfbe   :  { %v960_v7 = vmul.f32 %v958_v6, %v941_v48 }
 0xfc0   :  { %962 = vrot.lane.b32.xlu0 %v960_v7, %s1609_s19 }
 0xfc5   :  { %v1036_v9 = vpop.permute.xlu2 %1035 }
 0xfc6   :  { %v1038_v11 = vmul.f32 %v1036_v9, %v1019_v54 }
 0xfc8   :  { %1040 = vrot.lane.b32.xlu1 %v1038_v11, %s1609_s19 }
0x1032   :  { %v963_v13 = vpop.permute.xlu0 %962 }
0x1033   :  { %v1933_v57 = vadd.f32 %v1581_v52, %v963_v13 }
0x1035   :  { %v1937_v14 = vpack.c.bf16 %v1933_v57, %v1933_v57 }
0x1037   :  { %v1058_v15 = vunpack.c.l.b16 %v1937_v14 }
0x1039   :  { %v1059_v60 = vpack.c.b16 %v1058_v15, %v1058_v15 }
0x103a   :  { %v1041_v18 = vpop.permute.xlu1 %1040 }
0x103b   :  { %v1940_v10 = vadd.f32 %v1583_v4, %v1041_v18  ;;  %1060 = vrot.lane.b32.xlu2 %v1059_v60, %s1608_s2 }
0x103d   :  { %v1945_v19 = vpack.c.bf16 %v1940_v10, %v1940_v10 }
0x103f   :  { %v1136_v22 = vunpack.c.l.b16 %v1945_v19 }
0x1041   :  { %v1137_v23 = vpack.c.b16 %v1136_v22, %v1136_v22 }
0x1043   :  { %1138 = vrot.lane.b32.xlu0 %v1137_v23, %s1608_s2 }
0x1095   :  { %v1061_v24 = vpop.permute.xlu2 %1060 }
0x1096   :  { %1489 = vmatmul.msk.bf16.vlgmr.msrb.gmra.mxu0 %vm97_vm1, %v1061_v24 }
0x10b5   :  { %v1139_v25 = vpop.permute.xlu0 %1138 }
0x10b6   :  { %1493 = vmatmul.msk.bf16.vlgmr.msrb.gmra.mxu1 %vm97_vm1, %v1139_v25 }
0x1113   :  { %v1074_v26 = vpop.f32.mrf.mxu0 }
0x1114   :  { %v1099_v28 = vadd.f32 %v1074_v26, %v1717_v12  ;;  %v1079_v36 = vadd.f32 %v1078_v35, %v1074_v26 }
0x1116   :  { %1101 = vrot.lane.b32.xlu1 %v1099_v28, %s1608_s2  ;;  %v1490_v38 = vmul.f32 -1.442695, %v1079_v36 }
0x1118   :  { %1584 = vpow2.f32 %v1490_v38 }
0x111b   :  { %v1076_v20 = vpop.f32.mrf.mxu0 }
0x111e   :  { %v1585_v44 = vpop.eup %1584 }
0x111f   :  { %v1083_v45 = vadd.f32 1.0, %v1585_v44 }
0x1121   :  { %v1095_v54 = vand.u32 2147483648, %v1083_v45  ;;  %vm1089_vm9 = vweird.f32 %v1083_v45  ;;  %v1093_v55 = vand.u32 2147483647, %v1083_v45 }
0x1123   :  { %v1096_v52 = vor.u32 1.1754944e-38, %v1095_v54  ;;  %vm1094_vm11 = vcmp.eq.f32.partialorder %v1093_v55, 8.507059e+37 }
0x1133   :  { %v1152_v29 = vpop.f32.mrf.mxu1 }
0x1134   :  { %v1177_v32 = vadd.f32 %v1152_v29, %v1721_v16  ;;  %v1157_v30 = vadd.f32 %v1156_v40, %v1152_v29 }
0x1136   :  { %1179 = vrot.lane.b32.xlu2 %v1177_v32, %s1608_s2  ;;  %v1494_v41 = vmul.f32 -1.442695, %v1157_v30 }
0x1138   :  { %1586 = vpow2.f32 %v1494_v41 }
0x1139   :  { %1588 = vrcp.f32 %v1083_v45 }
0x113b   :  { %v1154_v33 = vpop.f32.mrf.mxu1 }
0x113e   :  { %v1587_v46 = vpop.eup %1586 }
0x113f   :  { %v1161_v47 = vadd.f32 1.0, %v1587_v46  ;;  %v1589_v48 = vpop.eup %1588 }
0x1140   :  { %v1085_v50 = vmul.f32 %v1589_v48, %v1083_v45  ;;  %vm1090_vm8 = vweird.f32 %v1589_v48 }
0x1141   :  { %1590 = vrcp.f32 %v1161_v47  ;;  %vm1091_vm10 = vmor %vm1089_vm9, %vm1090_vm8  ;;  %v1173_v5 = vand.u32 2147483648, %v1161_v47  ;;  %vm1167_vm13 = vweird.f32 %v1161_v47  ;;  %v1171_v6 = vand.u32 2147483647, %v1161_v47 }
0x1142   :  { %v1086_v42 = vsub.f32 1.0, %v1085_v50  ;;  %vm170_vm9 = vcmask 1040384  }
0x1143   :  { %v1174_v9 = vor.u32 1.1754944e-38, %v1173_v5  ;;  %vm1172_vm15 = vcmp.eq.f32.partialorder %v1171_v6, 8.507059e+37 }
0x1144   :  { %v1087_v2 = vmul.f32 %v1589_v48, %v1086_v42 }
0x1146   :  { %v1088_v1 = vadd.f32 %v1589_v48, %v1087_v2  ;;  %v1496_v2 = vld [vmem:[%s2152_s0 + $0x7] sm:$0x1] }
0x1147   :  { %v1591_v51 = vpop.eup %1590 }
0x1148   :  { %v1163_v53 = vmul.f32 %v1591_v51, %v1161_v47  ;;  %v1092_v56 = vsel %vm1091_vm10, %v1589_v48, %v1088_v1  ;;  %vm1168_vm12 = vweird.f32 %v1591_v51  ;;  %vm178_vm10 = vcmask 253952  }
0x1149   :  { %v1097_v62 = vsel %vm1094_vm11, %v1096_v52, %v1092_v56  ;;  %vm1169_vm14 = vmor %vm1167_vm13, %vm1168_vm12 }
0x114a   :  { %v1164_v3 = vsub.f32 1.0, %v1163_v53  ;;  %v1234_v53 = vunpack.c.l.bf16 %v1496_v2  ;;  %v968_v2 = vrot.slane %v1937_v14, 3 }
0x114c   :  { %v1165_v58 = vmul.f32 %v1591_v51, %v1164_v3 }
0x114e   :  { %v1166_v4 = vadd.f32 %v1591_v51, %v1165_v58 }
0x1150   :  { %v1170_v7 = vsel %vm1169_vm14, %v1591_v51, %v1166_v4 }
0x1151   :  { %v1175_v11 = vsel %vm1172_vm15, %v1174_v9, %v1170_v7 }
0x1188   :  { %v1102_v59 = vpop.permute.xlu1 %1101 }
0x1189   :  { %v1104_v63 = vmul.f32 %v1102_v59, %v1097_v62 }
0x118b   :  { %1106 = vrot.lane.b32.xlu0 %v1104_v63, %s1608_s2 }
0x1190   :  { %v1180_v13 = vpop.permute.xlu2 %1179 }
0x1191   :  { %v1182_v15 = vmul.f32 %v1180_v13, %v1175_v11 }
0x1193   :  { %1184 = vrot.lane.b32.xlu1 %v1182_v15, %s1608_s2 }
0x11fd   :  { %v1107_v60 = vpop.permute.xlu0 %1106 }
0x11fe   :  { %v1109_v18 = vadd.f32 %v1107_v60, %v1078_v35 }
0x1200   :  { %1592 = vtanh.f32 %v1109_v18 }
0x1205   :  { %v1185_v22 = vpop.permute.xlu1 %1184 }
0x1206   :  { %v1593_v23 = vpop.eup %1592  ;;  %v1187_v24 = vadd.f32 %v1185_v22, %v1156_v40 }
0x1207   :  { %v1111_v25 = vsub.f32 %v1933_v57, %v1593_v23 }
0x1208   :  { %1594 = vtanh.f32 %v1187_v24 }
0x1209   :  { %1113 = vrot.lane.b32.xlu2 %v1111_v25, %s1610_s24 }
0x120e   :  { %v1595_v26 = vpop.eup %1594 }
0x120f   :  { %v1189_v28 = vsub.f32 %v1940_v10, %v1595_v26 }
0x1211   :  { %1191 = vrot.lane.b32.xlu0 %v1189_v28, %s1610_s24 }
0x1263   :  { %v1114_v20 = vpop.permute.xlu2 %1113 }
0x1264   :  { %v1116_v29 = vmul.f32 %v1114_v20, %v1097_v62 }
0x1266   :  { %1118 = vrot.lane.b32.xlu1 %v1116_v29, %s1609_s19 }
0x1283   :  { %v1192_v32 = vpop.permute.xlu0 %1191 }
0x1284   :  { %v1194_v33 = vmul.f32 %v1192_v32, %v1175_v11 }
0x1286   :  { %1196 = vrot.lane.b32.xlu2 %v1194_v33, %s1609_s19 }
0x12d8   :  { %v1119_v34 = vpop.permute.xlu1 %1118 }
0x12d9   :  { %v1969_v35 = vadd.f32 %v1593_v23, %v1119_v34 }
0x12db   :  { %v1973_v57 = vpack.c.bf16 %v1969_v35, %v1969_v35 }
0x12dd   :  { %v1214_v36 = vunpack.c.l.b16 %v1973_v57 }
0x12df   :  { %v1215_v10 = vpack.c.b16 %v1214_v36, %v1214_v36 }
0x12e0   :  { %v1197_v37 = vpop.permute.xlu2 %1196 }
0x12e1   :  { %v1976_v38 = vadd.f32 %v1595_v26, %v1197_v37  ;;  %1216 = vrot.lane.b32.xlu0 %v1215_v10, %s1608_s2 }
0x12e3   :  { %v1981_v40 = vpack.c.bf16 %v1976_v38, %v1976_v38 }
0x12e5   :  { %v1291_v30 = vunpack.c.l.b16 %v1981_v40 }
0x12e7   :  { %v1292_v41 = vpack.c.b16 %v1291_v30, %v1291_v30 }
0x12e9   :  { %1293 = vrot.lane.b32.xlu1 %v1292_v41, %s1608_s2 }
0x1353   :  { %v1217_v44 = vpop.permute.xlu0 %1216 }
0x1354   :  { %1497 = vmatmul.msk.bf16.vlgmr.msrb.gmra.mxu2 %vm97_vm1, %v1217_v44 }
0x135b   :  { %v1294_v45 = vpop.permute.xlu1 %1293 }
0x135c   :  { %1500 = vmatmul.msk.bf16.vlgmr.msrb.gmra.mxu3 %vm97_vm1, %v1294_v45 }
0x13d7   :  { %v1230_v46 = vpop.f32.mrf.mxu2 }
0x13d8   :  { %v1255_v47 = vadd.f32 %v1230_v46, %v1717_v12  ;;  %v1235_v1 = vadd.f32 %v1234_v53, %v1230_v46  ;;  %v1290_v12 = vld [vmem:[%s2153_s1] sm:$0x1] }
0x13da   :  { %1257 = vrot.lane.b32.xlu2 %v1255_v47, %s1608_s2  ;;  %v1498_v3 = vmul.f32 -1.442695, %v1235_v1 }
0x13dc   :  { %1596 = vpow2.f32 %v1498_v3 }
0x13df   :  { %v1232_v48 = vpop.f32.mrf.mxu2  ;;  %v1307_v50 = vpop.f32.mrf.mxu3 }
0x13e0   :  { %v1332_v42 = vadd.f32 %v1307_v50, %v1721_v16  ;;  %v1311_v16 = vunpack.c.l.bf16 %v1290_v12  ;;  %v169_v48 = vrot.slane %v1745_v8, 3 }
0x13e2   :  { %1334 = vrot.lane.b32.xlu0 %v1332_v42, %s1608_s2  ;;  %v1597_v54 = vpop.eup %1596  ;;  %v1312_v52 = vadd.f32 %v1311_v16, %v1307_v50  ;;  %v173_v50 = vsel %vm170_vm9, %v1745_v8, %v169_v48  ;;  %v971_v8 = vsel %vm170_vm9, %v1937_v14, %v968_v2  ;;  %v578_v14 = vrot.slane %v1833_v43, 3 }
0x13e3   :  { %v1239_v55 = vadd.f32 1.0, %v1597_v54 }
0x13e4   :  { %v1501_v62 = vmul.f32 -1.442695, %v1312_v52 }
0x13e5   :  { %1598 = vrcp.f32 %v1239_v55  ;;  %v1251_v5 = vand.u32 2147483648, %v1239_v55  ;;  %vm1245_vm2 = vweird.f32 %v1239_v55  ;;  %v1249_v6 = vand.u32 2147483647, %v1239_v55 }
0x13e6   :  { %1600 = vpow2.f32 %v1501_v62  ;;  %v656_v62 = vrot.slane %v1865_v27, 3 }
0x13e7   :  { %v1309_v51 = vpop.f32.mrf.mxu3  ;;  %v1252_v11 = vor.u32 1.1754944e-38, %v1251_v5  ;;  %vm1250_vm4 = vcmp.eq.f32.partialorder %v1249_v6, 8.507059e+37 }
0x13e8   :  { %v734_v51 = vrot.slane %v1873_v0, 3 }
0x13eb   :  { %v1599_v56 = vpop.eup %1598 }
0x13ec   :  { %v1241_v58 = vmul.f32 %v1599_v56, %v1239_v55  ;;  %vm1246_vm1 = vweird.f32 %v1599_v56  ;;  %v1601_v7 = vpop.eup %1600  ;;  %v344_v55 = vrot.slane %v1785_v17, 3 }
0x13ed   :  { %vm1247_vm3 = vmor %vm1245_vm2, %vm1246_vm1  ;;  %v1316_v13 = vadd.f32 1.0, %v1601_v7 }
0x13ee   :  { %v1242_v59 = vsub.f32 1.0, %v1241_v58  ;;  %v422_v58 = vrot.slane %v1793_v31, 3 }
0x13ef   :  { %1602 = vrcp.f32 %v1316_v13  ;;  %v1328_v28 = vand.u32 2147483648, %v1316_v13  ;;  %vm1322_vm6 = vweird.f32 %v1316_v13  ;;  %v1326_v20 = vand.u32 2147483647, %v1316_v13 }
0x13f0   :  { %v1243_v63 = vmul.f32 %v1599_v56, %v1242_v59  ;;  %v1046_v59 = vrot.slane %v1945_v19, 3 }
0x13f1   :  { %v1329_v32 = vor.u32 1.1754944e-38, %v1328_v28  ;;  %vm1327_vm8 = vcmp.eq.f32.partialorder %v1326_v20, 8.507059e+37 }
0x13f2   :  { %v1244_v4 = vadd.f32 %v1599_v56, %v1243_v63 }
0x13f4   :  { %v1248_v9 = vsel %vm1247_vm3, %v1599_v56, %v1244_v4  ;;  %v581_v56 = vsel %vm170_vm9, %v1833_v43, %v578_v14  ;;  %v890_v4 = vrot.slane %v1909_v61, 3 }
0x13f5   :  { %v1253_v15 = vsel %vm1250_vm4, %v1252_v11, %v1248_v9  ;;  %v1603_v22 = vpop.eup %1602 }
0x13f6   :  { %v1318_v23 = vmul.f32 %v1603_v22, %v1316_v13  ;;  %vm1323_vm5 = vweird.f32 %v1603_v22  ;;  %v893_v6 = vsel %vm170_vm9, %v1909_v61, %v890_v4  ;;  %v1202_v13 = vrot.slane %v1981_v40, 3 }
0x13f7   :  { %vm1324_vm7 = vmor %vm1322_vm6, %vm1323_vm5 }
0x13f8   :  { %v1319_v24 = vsub.f32 1.0, %v1318_v23 }
0x13fa   :  { %v1320_v25 = vmul.f32 %v1603_v22, %v1319_v24 }
0x13fc   :  { %v1321_v26 = vadd.f32 %v1603_v22, %v1320_v25 }
0x13fe   :  { %v1325_v29 = vsel %vm1324_vm7, %v1603_v22, %v1321_v26 }
0x13ff   :  { %v1330_v34 = vsel %vm1327_vm8, %v1329_v32, %v1325_v29 }
0x1434   :  { %v1258_v60 = vpop.permute.xlu2 %1257 }
0x1435   :  { %v1260_v18 = vmul.f32 %v1258_v60, %v1253_v15 }
0x1437   :  { %1262 = vrot.lane.b32.xlu1 %v1260_v18, %s1608_s2 }
0x1454   :  { %v1335_v33 = vpop.permute.xlu0 %1334 }
0x1455   :  { %v1337_v36 = vmul.f32 %v1335_v33, %v1330_v34 }
0x1457   :  { %1339 = vrot.lane.b32.xlu2 %v1337_v36, %s1608_s2 }
0x14a9   :  { %v1263_v10 = vpop.permute.xlu1 %1262 }
0x14aa   :  { %v1265_v37 = vadd.f32 %v1263_v10, %v1234_v53 }
0x14ac   :  { %1604 = vtanh.f32 %v1265_v37 }
0x14b1   :  { %v1340_v30 = vpop.permute.xlu2 %1339 }
0x14b2   :  { %v1999_v41 = vpop.eup %1604  ;;  %v1342_v44 = vadd.f32 %v1340_v30, %v1311_v16  ;;  %v812_v16 = vrot.slane %v1901_v49, 3 }
0x14b3   :  { %v1267_v45 = vsub.f32 %v1969_v35, %v1999_v41  ;;  %v500_v35 = vrot.slane %v1825_v39, 3 }
0x14b4   :  { %1606 = vtanh.f32 %v1342_v44  ;;  %v815_v43 = vsel %vm170_vm9, %v1901_v49, %v812_v16  ;;  %v1049_v49 = vsel %vm170_vm9, %v1945_v19, %v1046_v59  ;;  %v1124_v19 = vrot.slane %v1973_v57, 3 }
0x14b5   :  { %1269 = vrot.lane.b32.xlu0 %v1267_v45, %s1610_s24  ;;  %v503_v42 = vsel %vm170_vm9, %v1825_v39, %v500_v35  ;;  %v266_v39 = vrot.slane %v1753_v21, 3 }
0x14ba   :  { %v2004_v46 = vpop.eup %1606 }
0x14bb   :  { %v1344_v47 = vsub.f32 %v1976_v38, %v2004_v46  ;;  %v737_v38 = vsel %vm170_vm9, %v1873_v0, %v734_v51  ;;  %v269_v0 = vsel %vm170_vm9, %v1753_v21, %v266_v39  ;;  %v347_v21 = vsel %vm170_vm9, %v1785_v17, %v344_v55 }
0x14bc   :  { %v425_v17 = vsel %vm170_vm9, %v1793_v31, %v422_v58  ;;  %v659_v31 = vsel %vm170_vm9, %v1865_v27, %v656_v62  ;;  %v1127_v27 = vsel %vm170_vm9, %v1973_v57, %v1124_v19  ;;  %v1205_v57 = vsel %vm170_vm9, %v1981_v40, %v1202_v13 }
0x14bd   :  { %1346 = vrot.lane.b32.xlu1 %v1344_v47, %s1610_s24 }
0x14c5   :  { %175 = vrot.lane.b32.xlu1 %v173_v50, %s1608_s2 }
0x14cd   :  { %505 = vrot.lane.b32.xlu1 %v503_v42, %s1608_s2 }
0x14d5   :  { %739 = vrot.lane.b32.xlu1 %v737_v38, %s1608_s2 }
0x14dd   :  { %973 = vrot.lane.b32.xlu1 %v971_v8, %s1608_s2 }
0x1527   :  { %v1270_v53 = vpop.permute.xlu0 %1269 }
0x1528   :  { %v1272_v1 = vmul.f32 %v1270_v53, %v1253_v15 }
0x152a   :  { %1274 = vrot.lane.b32.xlu2 %v1272_v1, %s1609_s19 }
0x152f   :  { %v1347_v3 = vpop.permute.xlu1 %1346 }
0x1530   :  { %v1349_v54 = vmul.f32 %v1347_v3, %v1330_v34 }
0x1532   :  { %271 = vrot.lane.b32.xlu2 %v269_v0, %s1608_s2  ;;  %1351 = vrot.lane.b32.xlu0 %v1349_v54, %s1609_s19 }
0x1537   :  { %v176_v12 = vpop.permute.xlu1 %175 }
0x1538   :  { %179 = vst.msk [vmem:[%s2154_s5] sm:$0x1] %vm178_vm10, %v176_v12 }
0x153a   :  { %583 = vrot.lane.b32.xlu2 %v581_v56, %s1608_s2  ;;  %349 = vrot.lane.b32.xlu0 %v347_v21, %s1608_s2 }
0x153f   :  { %v506_v52 = vpop.permute.xlu1 %505 }
0x1540   :  { %1459 = vst.msk [vmem:[%s2154_s5 + $0x2] sm:$0x1] %vm178_vm10, %v506_v52 }
0x1542   :  { %817 = vrot.lane.b32.xlu2 %v815_v43, %s1608_s2  ;;  %427 = vrot.lane.b32.xlu0 %v425_v17, %s1608_s2 }
0x1547   :  { %v740_v63 = vpop.permute.xlu1 %739 }
0x1548   :  { %1471 = vst.msk [vmem:[%s2155_s6 + $0x4] sm:$0x1] %vm178_vm10, %v740_v63 }
0x154a   :  { %1051 = vrot.lane.b32.xlu2 %v1049_v49, %s1608_s2  ;;  %661 = vrot.lane.b32.xlu0 %v659_v31, %s1608_s2 }
0x154f   :  { %v974_v5 = vpop.permute.xlu1 %973 }
0x1550   :  { %1483 = vst.msk [vmem:[%s2154_s5 + $0x5] sm:$0x1] %vm178_vm10, %v974_v5 }
0x1552   :  { %895 = vrot.lane.b32.xlu0 %v893_v6, %s1608_s2 }
0x155a   :  { %1129 = vrot.lane.b32.xlu0 %v1127_v27, %s1608_s2 }
0x1584   :  { %v1275_v7 = vpop.permute.xlu2 %1274 }
0x1585   :  { %v1277_v9 = vadd.f32 %v1999_v41, %v1275_v7 }
0x1587   :  { %1367 = vst [vmem:[#allocation1] ss:$4 sm:$0xff] %v1277_v9  ;;  %v1278_v28 = vpack.c.bf16 %v1277_v9, %v1277_v9 }
0x1589   :  { %v1280_v29 = vrot.slane %v1278_v28, 3 }
0x158b   :  { %v1283_v33 = vsel %vm170_vm9, %v1278_v28, %v1280_v29 }
0x158c   :  { %v272_v11 = vpop.permute.xlu2 %271 }
0x158d   :  { %1447 = vst.msk [vmem:[%s2155_s6 + $0x7] sm:$0x1] %vm178_vm10, %v272_v11 }
0x158e   :  { %v1368_v61 = vld.sshfl [vmem:[#allocation1] sm:$0xff pattern:$0x73625140] }
0x158f   :  { %1369 = vrot.lane.b32.xlu1 %v1368_v61, %s1608_s2 }
0x1594   :  { %v584_v15 = vpop.permute.xlu2 %583 }
0x1595   :  { %1463 = vst.msk [vmem:[%s2155_s6 + $0x5] sm:$0x1] %vm178_vm10, %v584_v15 }
0x1597   :  { %1207 = vrot.lane.b32.xlu1 %v1205_v57, %s1608_s2 }
0x159c   :  { %v818_v60 = vpop.permute.xlu2 %817 }
0x159d   :  { %1475 = vst.msk [vmem:[%s2154_s5 + $0x4] sm:$0x1] %vm178_vm10, %v818_v60 }
0x15a4   :  { %v1352_v18 = vpop.permute.xlu0 %1351  ;;  %v1052_v22 = vpop.permute.xlu2 %1051 }
0x15a5   :  { %v1354_v23 = vadd.f32 %v2004_v46, %v1352_v18  ;;  %1487 = vst.msk [vmem:[%s2155_s6 + $0x2] sm:$0x1] %vm178_vm10, %v1052_v22 }
0x15a7   :  { %v1355_v24 = vpack.c.bf16 %v1354_v23, %v1354_v23  ;;  %1375 = vst [vmem:[#allocation1] ss:$4 sm:$0xff] %v1354_v23 }
0x15a9   :  { %v1357_v40 = vrot.slane %v1355_v24, 3 }
0x15ab   :  { %v1360_v25 = vsel %vm170_vm9, %v1355_v24, %v1357_v40 }
0x15ac   :  { %1362 = vrot.lane.b32.xlu0 %v1360_v25, %s1608_s2  ;;  %v350_v26 = vpop.permute.xlu0 %349 }
0x15ad   :  { %1451 = vst.msk [vmem:[%s2154_s5 + $0x1] sm:$0x1] %vm178_vm10, %v350_v26 }
0x15ae   :  { %v1376_v20 = vld.sshfl [vmem:[#allocation1] sm:$0xff pattern:$0x73625140] }
0x15af   :  { %1377 = vrot.lane.b32.xlu2 %v1376_v20, %s1608_s2 }
0x15b4   :  { %v428_v32 = vpop.permute.xlu0 %427 }
0x15b5   :  { %1455 = vst.msk [vmem:[%s2155_s6 + $0x6] sm:$0x1] %vm178_vm10, %v428_v32 }
0x15b7   :  { %1285 = vrot.lane.b32.xlu2 %v1283_v33, %s1608_s2 }
0x15bc   :  { %v662_v34 = vpop.permute.xlu0 %661 }
0x15bd   :  { %1467 = vst.msk [vmem:[%s2154_s5 + $0x3] sm:$0x1] %vm178_vm10, %v662_v34 }
0x15c4   :  { %v896_v36 = vpop.permute.xlu0 %895 }
0x15c5   :  { %1479 = vst.msk [vmem:[%s2155_s6 + $0x3] sm:$0x1] %vm178_vm10, %v896_v36 }
0x15cc   :  { %v1130_v10 = vpop.permute.xlu0 %1129 }
0x15cd   :  { %1491 = vst.msk [vmem:[%s2154_s5 + $0x6] sm:$0x1] %vm178_vm10, %v1130_v10 }
0x1601   :  { %v1370_v37 = vpop.permute.xlu1 %1369 }
0x1602   :  { %1373 = vst.msk [vmem:[#allocation2] sm:$0x3] %vm60_vm0, %v1370_v37 }
0x1609   :  { %v1384_v30 = vld [vmem:[#allocation2] sm:$0x3]  ;;  %v1208_v41 = vpop.permute.xlu1 %1207  ;;  %v1378_v44 = vpop.permute.xlu2 %1377 }
0x160a   :  { %1385 = vst.msk [vmem:[%s2156_s7] sm:$0x3] %vm60_vm0, %v1384_v30 }
0x160b   :  { %1495 = vst.msk [vmem:[%s2155_s6 + $0x1] sm:$0x1] %vm178_vm10, %v1208_v41 }
0x160c   :  { %1380 = vst.msk [vmem:[#allocation3] sm:$0x3] %vm60_vm0, %v1378_v44 }
0x1611   :  { %v1286_v45 = vpop.permute.xlu2 %1285 }
0x1612   :  { %1499 = vst.msk [vmem:[%s2154_s5 + $0x7] sm:$0x1] %vm178_vm10, %v1286_v45 }
0x1613   :  { %v1386_v46 = vld [vmem:[#allocation3] sm:$0x3] }
0x1614   :  { %1502 = vst.msk [vmem:[%s2156_s7 + $0x2] sm:$0x3] %vm60_vm0, %v1386_v46 }
0x161e   :  { %v1363_v47 = vpop.permute.xlu0 %1362 }
0x161f   :  { %1365 = vst.msk [vmem:[%s2155_s6] sm:$0x1] %vm178_vm10, %v1363_v47 }

</bundles_post_ra>
